<compile_context>
chip_gen: v7x
topology: tpu7x:2x2x1
jax: 0.10.0
libtpu: 0.0.40
codegen_flags: <defaults>
</compile_context>

<pallas_src>
import math
import jax
import jax.numpy as jnp
from jax.experimental import pallas as pl
from jax.experimental.pallas import tpu as pltpu

B = 2          # batch
S = 8          # max_seq_length
H = 32         # hidden_size
NH = 2         # num_attention_heads
HD = H // NH   # attention head size
FF = 4 * H     # intermediate size
N_LAYERS = 2
ITEM_SIZE = 100
N_CLUSTERS = 4
STD = 0.02
EPS = 1e-12    # LayerNorm eps


# ---------------------------------------------------------------------------
# in-kernel helpers
# ---------------------------------------------------------------------------
def _layernorm(x, w, b):
    # SASRec LayerNorm: biased variance, eps inside sqrt.
    u = jnp.mean(x, axis=-1, keepdims=True)
    s = jnp.mean((x - u) ** 2, axis=-1, keepdims=True)
    return ((x - u) / jnp.sqrt(s + EPS)) * w + b


def _gelu(x):
    # SASRec gelu: x * 0.5 * (1 + erf(x / sqrt(2)))
    return x * 0.5 * (1.0 + jax.lax.erf(x / math.sqrt(2.0)))


# ---------------------------------------------------------------------------
# single fused Pallas kernel: whole forward pass, whole batch
# ---------------------------------------------------------------------------
def sasrec_kernel(ids_ref, ids_col_ref, item_ref, pos_ref, eln_w_ref, eln_b_ref,
                  wqkv_ref, bqkv_ref, wo_ref, bo_ref, ln1w_ref, ln1b_ref,
                  w1_ref, b1_ref, w2_ref, b2_ref, ln2w_ref, ln2b_ref,
                  out_ref):
    ids = ids_ref[...]                                      # (B, S) int32

    # ---- additive attention mask (B, S, S): 0 attendable, -10000 blocked ----
    pad = (ids > 0).astype(jnp.float32)                     # (B, S)
    qpos = jax.lax.broadcasted_iota(jnp.int32, (S, S), 0)
    kpos = jax.lax.broadcasted_iota(jnp.int32, (S, S), 1)
    causal = (kpos <= qpos).astype(jnp.float32)             # (S, S)
    add_mask = (1.0 - pad[:, None, :] * causal[None, :, :]) * -10000.0  # (B,S,S)

    # ---- item embedding lookup via one-hot matmul (table row 0 is zero) ----
    item_iota = jax.lax.broadcasted_iota(jnp.int32, (B * S, ITEM_SIZE), 1)
    one_hot = (ids_col_ref[...] == item_iota).astype(jnp.float32)       # (BS, I)
    emb = jnp.dot(one_hot, item_ref[...],
                  preferred_element_type=jnp.float32)                   # (BS, H)
    emb = (emb.reshape(B, S, H) + pos_ref[...][None, :, :]).reshape(B * S, H)
    x = _layernorm(emb, eln_w_ref[...], eln_b_ref[...])
    # hidden_dropout_prob -> identity (eval / p=0)

    scale = 1.0 / math.sqrt(HD)
    for l in range(N_LAYERS):                # static layer loop, weights in VMEM
        # ---------------- self-attention ----------------
        qkv = jnp.dot(x, wqkv_ref[l],
                      preferred_element_type=jnp.float32) + bqkv_ref[l]  # (BS, 3H)
        q = qkv[:, 0 * H:1 * H].reshape(B, S, H)
        k = qkv[:, 1 * H:2 * H].reshape(B, S, H)
        v = qkv[:, 2 * H:3 * H].reshape(B, S, H)
        wo = wo_ref[l]                                      # (H, H)

        attn_out = jnp.zeros((B * S, H), jnp.float32)
        for h in range(NH):                                 # static head loop
            sl = slice(h * HD, (h + 1) * HD)
            qh, kh, vh = q[..., sl], k[..., sl], v[..., sl]  # (B, S, HD)
            sc = jnp.einsum('bqd,bkd->bqk', qh, kh,
                            preferred_element_type=jnp.float32) * scale
            sc = sc + add_mask                               # (B, S, S)
            m = jnp.max(sc, axis=-1, keepdims=True)
            e = jnp.exp(sc - m)
            denom = jnp.sum(e, axis=-1, keepdims=True)
            p = e * pl.reciprocal(denom, approx=True)        # attn_dropout p=0
            ctx = jnp.einsum('bqk,bkd->bqd', p, vh,
                             preferred_element_type=jnp.float32)  # (B, S, HD)
            # fold head directly into the output projection (no concat)
            attn_out = attn_out + jnp.dot(ctx.reshape(B * S, HD), wo[sl, :],
                                          preferred_element_type=jnp.float32)
        attn_out = attn_out + bo_ref[l]
        # out_dropout p=0 -> identity; residual + LayerNorm
        x = _layernorm(attn_out + x, ln1w_ref[l], ln1b_ref[l])

        # ---------------- feed-forward ----------------
        hdn = jnp.dot(x, w1_ref[l], preferred_element_type=jnp.float32) + b1_ref[l]
        hdn = _gelu(hdn)
        hdn = jnp.dot(hdn, w2_ref[l], preferred_element_type=jnp.float32) + b2_ref[l]
        x = _layernorm(hdn + x, ln2w_ref[l], ln2b_ref[l])

    out_ref[...] = x                                         # (B*S, H)


# ---------------------------------------------------------------------------
# wrapper
# ---------------------------------------------------------------------------
def forward(params, input_ids):
    ids = input_ids.astype(jnp.int32)                        # (B, S)
    ids_col = ids.reshape(B * S, 1)                          # token ids, column layout
    args = (ids, ids_col,
            params["item_emb"], params["pos_emb"],
            params["emb_ln_w"], params["emb_ln_b"],
            params["w_qkv"], params["b_qkv"], params["w_o"], params["b_o"],
            params["ln1_w"], params["ln1_b"],
            params["w_ff1"], params["b_ff1"], params["w_ff2"], params["b_ff2"],
            params["ln2_w"], params["ln2_b"])
    vmem = pl.BlockSpec(memory_space=pltpu.MemorySpace.VMEM)  # whole array in VMEM
    out = pl.pallas_call(
        sasrec_kernel,
        out_shape=jax.ShapeDtypeStruct((B * S, H), jnp.float32),
        in_specs=[vmem] * len(args),
        out_specs=vmem,
    )(*args)
    return out.reshape(B, S, H)


forward = jax.jit(forward)


# ---------------------------------------------------------------------------
# parameter init (mirrors init_weights: N(0, 0.02), LN weight=1 / bias=0)
# ---------------------------------------------------------------------------
def init_params(key):
    keys = iter(jax.random.split(key, 32))

    def nrm(shape):
        return STD * jax.random.normal(next(keys), shape, jnp.float32)

    item_emb = nrm((ITEM_SIZE, H)).at[0].set(0.0)            # padding_idx=0 row
    params = dict(
        item_emb=item_emb,
        pos_emb=nrm((S, H)),
        emb_ln_w=jnp.ones((1, H), jnp.float32),
        emb_ln_b=jnp.zeros((1, H), jnp.float32),
        cluster_centers=nrm((N_CLUSTERS, H)),                # unused in forward
        # packed Q/K/V projection + stacked per-layer weights
        w_qkv=nrm((N_LAYERS, H, 3 * H)),
        b_qkv=jnp.zeros((N_LAYERS, 1, 3 * H), jnp.float32),
        w_o=nrm((N_LAYERS, H, H)),
        b_o=jnp.zeros((N_LAYERS, 1, H), jnp.float32),
        ln1_w=jnp.ones((N_LAYERS, 1, H), jnp.float32),
        ln1_b=jnp.zeros((N_LAYERS, 1, H), jnp.float32),
        w_ff1=nrm((N_LAYERS, H, FF)),
        b_ff1=jnp.zeros((N_LAYERS, 1, FF), jnp.float32),
        w_ff2=nrm((N_LAYERS, FF, H)),
        b_ff2=jnp.zeros((N_LAYERS, 1, H), jnp.float32),
        ln2_w=jnp.ones((N_LAYERS, 1, H), jnp.float32),
        ln2_b=jnp.zeros((N_LAYERS, 1, H), jnp.float32),
    )
    return params


# ---------------------------------------------------------------------------
# pure-JAX reference for validating the fused Pallas kernel
# ---------------------------------------------------------------------------
def forward_ref(params, input_ids):
    pad = (input_ids > 0).astype(jnp.float32)
    causal = jnp.tril(jnp.ones((S, S), jnp.float32))
    ext = (1.0 - pad[:, None, None, :] * causal[None, None, :, :]) * -10000.0

    def ln(x, w, b):
        u = x.mean(-1, keepdims=True)
        s = ((x - u) ** 2).mean(-1, keepdims=True)
        return (x - u) / jnp.sqrt(s + EPS) * w + b

    x = params["item_emb"][input_ids] + params["pos_emb"][jnp.arange(S)][None]
    x = ln(x, params["emb_ln_w"], params["emb_ln_b"])
    for l in range(N_LAYERS):
        qkv = x @ params["w_qkv"][l] + params["b_qkv"][l]
        q, k, v = qkv[..., :H], qkv[..., H:2 * H], qkv[..., 2 * H:]
        q = q.reshape(B, S, NH, HD).transpose(0, 2, 1, 3)
        k = k.reshape(B, S, NH, HD).transpose(0, 2, 1, 3)
        v = v.reshape(B, S, NH, HD).transpose(0, 2, 1, 3)
        sc = jnp.einsum("bhqd,bhkd->bhqk", q, k) / math.sqrt(HD) + ext
        p = jax.nn.softmax(sc, axis=-1)
        ctx = jnp.einsum("bhqk,bhkd->bhqd", p, v).transpose(0, 2, 1, 3).reshape(B, S, H)
        x = ln(ctx @ params["w_o"][l] + params["b_o"][l] + x,
               params["ln1_w"][l], params["ln1_b"][l])
        h1 = x @ params["w_ff1"][l] + params["b_ff1"][l]
        h1 = h1 * 0.5 * (1.0 + jax.lax.erf(h1 / math.sqrt(2.0)))
        h1 = h1 @ params["w_ff2"][l] + params["b_ff2"][l]
        x = ln(h1 + x, params["ln2_w"][l], params["ln2_b"][l])
    return x


if __name__ == "__main__":
    key = jax.random.PRNGKey(0)
    pkey, ikey = jax.random.split(key)
    params = init_params(pkey)
    # ids in [0, item_size); zeros act as padding positions
    input_ids = jax.random.randint(ikey, (B, S), 0, ITEM_SIZE, dtype=jnp.int32)

    out = jax.block_until_ready(forward(params, input_ids))
    ref = forward_ref(params, input_ids)
    assert out.shape == (B, S, H)
    assert jnp.allclose(out, ref, atol=2e-3, rtol=2e-3), float(jnp.max(jnp.abs(out - ref)))
    # TODO(synk): dropout layers are identity here (eval / p=0); training-mode dropout
    # and the BCELoss criterion are not part of the forward spec and are not modeled.
    print("KERNEL_OK")
</pallas_src>

<mosaic_0001>
module attributes {stable_mosaic.version = 11 : i64} {
  func.func @sasrec_kernel(%arg0: memref<2x8xi32, #tpu.memory_space<vmem>>, %arg1: memref<16x1xi32, #tpu.memory_space<vmem>>, %arg2: memref<100x32xf32, #tpu.memory_space<vmem>>, %arg3: memref<8x32xf32, #tpu.memory_space<vmem>>, %arg4: memref<1x32xf32, #tpu.memory_space<vmem>>, %arg5: memref<1x32xf32, #tpu.memory_space<vmem>>, %arg6: memref<2x32x96xf32, #tpu.memory_space<vmem>>, %arg7: memref<2x1x96xf32, #tpu.memory_space<vmem>>, %arg8: memref<2x32x32xf32, #tpu.memory_space<vmem>>, %arg9: memref<2x1x32xf32, #tpu.memory_space<vmem>>, %arg10: memref<2x1x32xf32, #tpu.memory_space<vmem>>, %arg11: memref<2x1x32xf32, #tpu.memory_space<vmem>>, %arg12: memref<2x32x128xf32, #tpu.memory_space<vmem>>, %arg13: memref<2x1x128xf32, #tpu.memory_space<vmem>>, %arg14: memref<2x128x32xf32, #tpu.memory_space<vmem>>, %arg15: memref<2x1x32xf32, #tpu.memory_space<vmem>>, %arg16: memref<2x1x32xf32, #tpu.memory_space<vmem>>, %arg17: memref<2x1x32xf32, #tpu.memory_space<vmem>>, %arg18: memref<16x32xf32, #tpu.memory_space<vmem>>) attributes {dimension_semantics = [], scalar_prefetch = 0 : i64, scratch_operands = 0 : i64, tpu.core_type = #tpu.core_type<tc>} {
    %c0 = arith.constant 0 : index
    %c0_0 = arith.constant 0 : index
    %0 = vector.load %arg0[%c0, %c0_0] : memref<2x8xi32, #tpu.memory_space<vmem>>, vector<2x8xi32>
    %c0_i32 = arith.constant 0 : i32
    %1 = vector.broadcast %c0_i32 : i32 to vector<2x8xi32>
    %2 = arith.cmpi sgt, %0, %1 : vector<2x8xi32>
    %3 = arith.extui %2 : vector<2x8xi1> to vector<2x8xi32>
    %4 = arith.sitofp %3 : vector<2x8xi32> to vector<2x8xf32>
    %5 = tpu.iota {dimensions = array<i32: 0>} : vector<8x8xi32>
    %6 = tpu.iota {dimensions = array<i32: 1>} : vector<8x8xi32>
    %7 = arith.cmpi sle, %6, %5 : vector<8x8xi32>
    %8 = arith.extui %7 : vector<8x8xi1> to vector<8x8xi32>
    %9 = arith.sitofp %8 : vector<8x8xi32> to vector<8x8xf32>
    %10 = vector.shape_cast %4 : vector<2x8xf32> to vector<2x1x8xf32>
    %11 = vector.shape_cast %9 : vector<8x8xf32> to vector<1x8x8xf32>
    %12 = vector.broadcast %10 : vector<2x1x8xf32> to vector<2x8x8xf32>
    %13 = vector.broadcast %11 : vector<1x8x8xf32> to vector<2x8x8xf32>
    %14 = arith.mulf %12, %13 : vector<2x8x8xf32>
    %cst = arith.constant 1.000000e+00 : f32
    %15 = vector.broadcast %cst : f32 to vector<2x8x8xf32>
    %16 = arith.subf %15, %14 : vector<2x8x8xf32>
    %cst_1 = arith.constant -1.000000e+04 : f32
    %17 = vector.broadcast %cst_1 : f32 to vector<2x8x8xf32>
    %18 = arith.mulf %16, %17 : vector<2x8x8xf32>
    %19 = tpu.iota {dimensions = array<i32: 1>} : vector<16x100xi32>
    %c0_2 = arith.constant 0 : index
    %c0_3 = arith.constant 0 : index
    %20 = vector.load %arg1[%c0_2, %c0_3] : memref<16x1xi32, #tpu.memory_space<vmem>>, vector<16x1xi32>
    %21 = vector.broadcast %20 : vector<16x1xi32> to vector<16x100xi32>
    %22 = arith.cmpi eq, %21, %19 : vector<16x100xi32>
    %23 = arith.extui %22 : vector<16x100xi1> to vector<16x100xi32>
    %24 = arith.sitofp %23 : vector<16x100xi32> to vector<16x100xf32>
    %c0_4 = arith.constant 0 : index
    %c0_5 = arith.constant 0 : index
    %25 = vector.load %arg2[%c0_4, %c0_5] : memref<100x32xf32, #tpu.memory_space<vmem>>, vector<100x32xf32>
    %cst_6 = arith.constant dense<0.000000e+00> : vector<16x32xf32>
    %26 = tpu.matmul %24, %25, %cst_6 {dimension_numbers = #tpu.dot_dimension_numbers<[1], [0], [0], [1], [0, 0, 1, 1], [], []>} : vector<16x100xf32>, vector<100x32xf32>, vector<16x32xf32> -> vector<16x32xf32>
    %27 = vector.shape_cast %26 : vector<16x32xf32> to vector<2x8x32xf32>
    %c0_7 = arith.constant 0 : index
    %c0_8 = arith.constant 0 : index
    %28 = vector.load %arg3[%c0_7, %c0_8] : memref<8x32xf32, #tpu.memory_space<vmem>>, vector<8x32xf32>
    %29 = vector.shape_cast %28 : vector<8x32xf32> to vector<1x8x32xf32>
    %30 = vector.broadcast %29 : vector<1x8x32xf32> to vector<2x8x32xf32>
    %31 = arith.addf %27, %30 : vector<2x8x32xf32>
    %32 = vector.shape_cast %31 : vector<2x8x32xf32> to vector<16x32xf32>
    %c0_9 = arith.constant 0 : index
    %c0_10 = arith.constant 0 : index
    %33 = vector.load %arg4[%c0_9, %c0_10] : memref<1x32xf32, #tpu.memory_space<vmem>>, vector<1x32xf32>
    %c0_11 = arith.constant 0 : index
    %c0_12 = arith.constant 0 : index
    %34 = vector.load %arg5[%c0_11, %c0_12] : memref<1x32xf32, #tpu.memory_space<vmem>>, vector<1x32xf32>
    %cst_13 = arith.constant dense<0.000000e+00> : vector<16xf32>
    %35 = vector.multi_reduction <add>, %32, %cst_13 [1] : vector<16x32xf32> to vector<16xf32>
    %36 = vector.shape_cast %35 : vector<16xf32> to vector<16x1xf32>
    %cst_14 = arith.constant 3.200000e+01 : f32
    %37 = vector.broadcast %cst_14 : f32 to vector<16x1xf32>
    %38 = arith.divf %36, %37 : vector<16x1xf32>
    %39 = vector.broadcast %38 : vector<16x1xf32> to vector<16x32xf32>
    %40 = arith.subf %32, %39 : vector<16x32xf32>
    %41 = arith.mulf %40, %40 : vector<16x32xf32>
    %cst_15 = arith.constant dense<0.000000e+00> : vector<16xf32>
    %42 = vector.multi_reduction <add>, %41, %cst_15 [1] : vector<16x32xf32> to vector<16xf32>
    %43 = vector.shape_cast %42 : vector<16xf32> to vector<16x1xf32>
    %cst_16 = arith.constant 3.200000e+01 : f32
    %44 = vector.broadcast %cst_16 : f32 to vector<16x1xf32>
    %45 = arith.divf %43, %44 : vector<16x1xf32>
    %46 = vector.broadcast %38 : vector<16x1xf32> to vector<16x32xf32>
    %47 = arith.subf %32, %46 : vector<16x32xf32>
    %cst_17 = arith.constant 9.99999996E-13 : f32
    %48 = vector.broadcast %cst_17 : f32 to vector<16x1xf32>
    %49 = arith.addf %45, %48 : vector<16x1xf32>
    %50 = math.sqrt %49 : vector<16x1xf32>
    %51 = vector.broadcast %50 : vector<16x1xf32> to vector<16x32xf32>
    %52 = arith.divf %47, %51 : vector<16x32xf32>
    %53 = vector.broadcast %33 : vector<1x32xf32> to vector<16x32xf32>
    %54 = arith.mulf %52, %53 : vector<16x32xf32>
    %55 = vector.broadcast %34 : vector<1x32xf32> to vector<16x32xf32>
    %56 = arith.addf %54, %55 : vector<16x32xf32>
    %c0_18 = arith.constant 0 : index
    %c0_19 = arith.constant 0 : index
    %c0_20 = arith.constant 0 : index
    %57 = vector.load %arg6[%c0_18, %c0_19, %c0_20] : memref<2x32x96xf32, #tpu.memory_space<vmem>>, vector<1x32x96xf32>
    %58 = vector.shape_cast %57 : vector<1x32x96xf32> to vector<32x96xf32>
    %cst_21 = arith.constant dense<0.000000e+00> : vector<16x96xf32>
    %59 = tpu.matmul %56, %58, %cst_21 {dimension_numbers = #tpu.dot_dimension_numbers<[1], [0], [0], [1], [0, 0, 1, 1], [], []>} : vector<16x32xf32>, vector<32x96xf32>, vector<16x96xf32> -> vector<16x96xf32>
    %c0_22 = arith.constant 0 : index
    %c0_23 = arith.constant 0 : index
    %c0_24 = arith.constant 0 : index
    %60 = vector.load %arg7[%c0_22, %c0_23, %c0_24] : memref<2x1x96xf32, #tpu.memory_space<vmem>>, vector<1x1x96xf32>
    %61 = vector.shape_cast %60 : vector<1x1x96xf32> to vector<1x96xf32>
    %62 = vector.broadcast %61 : vector<1x96xf32> to vector<16x96xf32>
    %63 = arith.addf %59, %62 : vector<16x96xf32>
    %64 = vector.extract_strided_slice %63 {offsets = [0, 0], sizes = [16, 32], strides = [1, 1]} : vector<16x96xf32> to vector<16x32xf32>
    %65 = vector.shape_cast %64 : vector<16x32xf32> to vector<2x8x32xf32>
    %66 = vector.extract_strided_slice %63 {offsets = [0, 32], sizes = [16, 32], strides = [1, 1]} : vector<16x96xf32> to vector<16x32xf32>
    %67 = vector.shape_cast %66 : vector<16x32xf32> to vector<2x8x32xf32>
    %68 = vector.extract_strided_slice %63 {offsets = [0, 64], sizes = [16, 32], strides = [1, 1]} : vector<16x96xf32> to vector<16x32xf32>
    %69 = vector.shape_cast %68 : vector<16x32xf32> to vector<2x8x32xf32>
    %c0_25 = arith.constant 0 : index
    %c0_26 = arith.constant 0 : index
    %c0_27 = arith.constant 0 : index
    %70 = vector.load %arg8[%c0_25, %c0_26, %c0_27] : memref<2x32x32xf32, #tpu.memory_space<vmem>>, vector<1x32x32xf32>
    %71 = vector.shape_cast %70 : vector<1x32x32xf32> to vector<32x32xf32>
    %cst_28 = arith.constant 0.000000e+00 : f32
    %72 = vector.broadcast %cst_28 : f32 to vector<16x32xf32>
    %73 = vector.extract_strided_slice %65 {offsets = [0, 0, 0], sizes = [2, 8, 16], strides = [1, 1, 1]} : vector<2x8x32xf32> to vector<2x8x16xf32>
    %74 = vector.extract_strided_slice %67 {offsets = [0, 0, 0], sizes = [2, 8, 16], strides = [1, 1, 1]} : vector<2x8x32xf32> to vector<2x8x16xf32>
    %75 = vector.extract_strided_slice %69 {offsets = [0, 0, 0], sizes = [2, 8, 16], strides = [1, 1, 1]} : vector<2x8x32xf32> to vector<2x8x16xf32>
    "tpu.trace_start"() <{level = 10 : i32, message = "bqd,bkd->bqk"}> : () -> ()
    %cst_29 = arith.constant dense<0.000000e+00> : vector<2x8x8xf32>
    %76 = tpu.matmul %73, %74, %cst_29 {dimension_numbers = #tpu.dot_dimension_numbers<[2], [2], [1], [1], [0, 0, 0, 1, 1, 1], [0], [0]>} : vector<2x8x16xf32>, vector<2x8x16xf32>, vector<2x8x8xf32> -> vector<2x8x8xf32>
    "tpu.trace_stop"() : () -> ()
    %cst_30 = arith.constant 2.500000e-01 : f32
    %77 = vector.broadcast %cst_30 : f32 to vector<2x8x8xf32>
    %78 = arith.mulf %76, %77 : vector<2x8x8xf32>
    %79 = arith.addf %78, %18 : vector<2x8x8xf32>
    %cst_31 = arith.constant dense<0xFF800000> : vector<2x8xf32>
    %80 = vector.multi_reduction <maximumf>, %79, %cst_31 [2] : vector<2x8x8xf32> to vector<2x8xf32>
    %81 = vector.shape_cast %80 : vector<2x8xf32> to vector<2x8x1xf32>
    %82 = vector.broadcast %81 : vector<2x8x1xf32> to vector<2x8x8xf32>
    %83 = arith.subf %79, %82 : vector<2x8x8xf32>
    %84 = math.exp %83 : vector<2x8x8xf32>
    %cst_32 = arith.constant dense<0.000000e+00> : vector<2x8xf32>
    %85 = vector.multi_reduction <add>, %84, %cst_32 [2] : vector<2x8x8xf32> to vector<2x8xf32>
    %86 = vector.shape_cast %85 : vector<2x8xf32> to vector<2x8x1xf32>
    %87 = tpu.reciprocal %86 {approx = true} : vector<2x8x1xf32> -> vector<2x8x1xf32>
    %88 = vector.broadcast %87 : vector<2x8x1xf32> to vector<2x8x8xf32>
    %89 = arith.mulf %84, %88 : vector<2x8x8xf32>
    "tpu.trace_start"() <{level = 10 : i32, message = "bqk,bkd->bqd"}> : () -> ()
    %cst_33 = arith.constant dense<0.000000e+00> : vector<2x8x16xf32>
    %90 = tpu.matmul %89, %75, %cst_33 {dimension_numbers = #tpu.dot_dimension_numbers<[2], [1], [1], [2], [0, 0, 0, 1, 1, 2], [0], [0]>} : vector<2x8x8xf32>, vector<2x8x16xf32>, vector<2x8x16xf32> -> vector<2x8x16xf32>
    "tpu.trace_stop"() : () -> ()
    %91 = vector.shape_cast %90 : vector<2x8x16xf32> to vector<16x16xf32>
    %92 = vector.extract_strided_slice %71 {offsets = [0, 0], sizes = [16, 32], strides = [1, 1]} : vector<32x32xf32> to vector<16x32xf32>
    %cst_34 = arith.constant dense<0.000000e+00> : vector<16x32xf32>
    %93 = tpu.matmul %91, %92, %cst_34 {dimension_numbers = #tpu.dot_dimension_numbers<[1], [0], [0], [1], [0, 0, 1, 1], [], []>} : vector<16x16xf32>, vector<16x32xf32>, vector<16x32xf32> -> vector<16x32xf32>
    %94 = arith.addf %72, %93 : vector<16x32xf32>
    %95 = vector.extract_strided_slice %65 {offsets = [0, 0, 16], sizes = [2, 8, 16], strides = [1, 1, 1]} : vector<2x8x32xf32> to vector<2x8x16xf32>
    %96 = vector.extract_strided_slice %67 {offsets = [0, 0, 16], sizes = [2, 8, 16], strides = [1, 1, 1]} : vector<2x8x32xf32> to vector<2x8x16xf32>
    %97 = vector.extract_strided_slice %69 {offsets = [0, 0, 16], sizes = [2, 8, 16], strides = [1, 1, 1]} : vector<2x8x32xf32> to vector<2x8x16xf32>
    "tpu.trace_start"() <{level = 10 : i32, message = "bqd,bkd->bqk"}> : () -> ()
    %cst_35 = arith.constant dense<0.000000e+00> : vector<2x8x8xf32>
    %98 = tpu.matmul %95, %96, %cst_35 {dimension_numbers = #tpu.dot_dimension_numbers<[2], [2], [1], [1], [0, 0, 0, 1, 1, 1], [0], [0]>} : vector<2x8x16xf32>, vector<2x8x16xf32>, vector<2x8x8xf32> -> vector<2x8x8xf32>
    "tpu.trace_stop"() : () -> ()
    %cst_36 = arith.constant 2.500000e-01 : f32
    %99 = vector.broadcast %cst_36 : f32 to vector<2x8x8xf32>
    %100 = arith.mulf %98, %99 : vector<2x8x8xf32>
    %101 = arith.addf %100, %18 : vector<2x8x8xf32>
    %cst_37 = arith.constant dense<0xFF800000> : vector<2x8xf32>
    %102 = vector.multi_reduction <maximumf>, %101, %cst_37 [2] : vector<2x8x8xf32> to vector<2x8xf32>
    %103 = vector.shape_cast %102 : vector<2x8xf32> to vector<2x8x1xf32>
    %104 = vector.broadcast %103 : vector<2x8x1xf32> to vector<2x8x8xf32>
    %105 = arith.subf %101, %104 : vector<2x8x8xf32>
    %106 = math.exp %105 : vector<2x8x8xf32>
    %cst_38 = arith.constant dense<0.000000e+00> : vector<2x8xf32>
    %107 = vector.multi_reduction <add>, %106, %cst_38 [2] : vector<2x8x8xf32> to vector<2x8xf32>
    %108 = vector.shape_cast %107 : vector<2x8xf32> to vector<2x8x1xf32>
    %109 = tpu.reciprocal %108 {approx = true} : vector<2x8x1xf32> -> vector<2x8x1xf32>
    %110 = vector.broadcast %109 : vector<2x8x1xf32> to vector<2x8x8xf32>
    %111 = arith.mulf %106, %110 : vector<2x8x8xf32>
    "tpu.trace_start"() <{level = 10 : i32, message = "bqk,bkd->bqd"}> : () -> ()
    %cst_39 = arith.constant dense<0.000000e+00> : vector<2x8x16xf32>
    %112 = tpu.matmul %111, %97, %cst_39 {dimension_numbers = #tpu.dot_dimension_numbers<[2], [1], [1], [2], [0, 0, 0, 1, 1, 2], [0], [0]>} : vector<2x8x8xf32>, vector<2x8x16xf32>, vector<2x8x16xf32> -> vector<2x8x16xf32>
    "tpu.trace_stop"() : () -> ()
    %113 = vector.shape_cast %112 : vector<2x8x16xf32> to vector<16x16xf32>
    %114 = vector.extract_strided_slice %71 {offsets = [16, 0], sizes = [16, 32], strides = [1, 1]} : vector<32x32xf32> to vector<16x32xf32>
    %cst_40 = arith.constant dense<0.000000e+00> : vector<16x32xf32>
    %115 = tpu.matmul %113, %114, %cst_40 {dimension_numbers = #tpu.dot_dimension_numbers<[1], [0], [0], [1], [0, 0, 1, 1], [], []>} : vector<16x16xf32>, vector<16x32xf32>, vector<16x32xf32> -> vector<16x32xf32>
    %116 = arith.addf %94, %115 : vector<16x32xf32>
    %c0_41 = arith.constant 0 : index
    %c0_42 = arith.constant 0 : index
    %c0_43 = arith.constant 0 : index
    %117 = vector.load %arg9[%c0_41, %c0_42, %c0_43] : memref<2x1x32xf32, #tpu.memory_space<vmem>>, vector<1x1x32xf32>
    %118 = vector.shape_cast %117 : vector<1x1x32xf32> to vector<1x32xf32>
    %119 = vector.broadcast %118 : vector<1x32xf32> to vector<16x32xf32>
    %120 = arith.addf %116, %119 : vector<16x32xf32>
    %121 = arith.addf %120, %56 : vector<16x32xf32>
    %c0_44 = arith.constant 0 : index
    %c0_45 = arith.constant 0 : index
    %c0_46 = arith.constant 0 : index
    %122 = vector.load %arg10[%c0_44, %c0_45, %c0_46] : memref<2x1x32xf32, #tpu.memory_space<vmem>>, vector<1x1x32xf32>
    %123 = vector.shape_cast %122 : vector<1x1x32xf32> to vector<1x32xf32>
    %c0_47 = arith.constant 0 : index
    %c0_48 = arith.constant 0 : index
    %c0_49 = arith.constant 0 : index
    %124 = vector.load %arg11[%c0_47, %c0_48, %c0_49] : memref<2x1x32xf32, #tpu.memory_space<vmem>>, vector<1x1x32xf32>
    %125 = vector.shape_cast %124 : vector<1x1x32xf32> to vector<1x32xf32>
    %cst_50 = arith.constant dense<0.000000e+00> : vector<16xf32>
    %126 = vector.multi_reduction <add>, %121, %cst_50 [1] : vector<16x32xf32> to vector<16xf32>
    %127 = vector.shape_cast %126 : vector<16xf32> to vector<16x1xf32>
    %cst_51 = arith.constant 3.200000e+01 : f32
    %128 = vector.broadcast %cst_51 : f32 to vector<16x1xf32>
    %129 = arith.divf %127, %128 : vector<16x1xf32>
    %130 = vector.broadcast %129 : vector<16x1xf32> to vector<16x32xf32>
    %131 = arith.subf %121, %130 : vector<16x32xf32>
    %132 = arith.mulf %131, %131 : vector<16x32xf32>
    %cst_52 = arith.constant dense<0.000000e+00> : vector<16xf32>
    %133 = vector.multi_reduction <add>, %132, %cst_52 [1] : vector<16x32xf32> to vector<16xf32>
    %134 = vector.shape_cast %133 : vector<16xf32> to vector<16x1xf32>
    %cst_53 = arith.constant 3.200000e+01 : f32
    %135 = vector.broadcast %cst_53 : f32 to vector<16x1xf32>
    %136 = arith.divf %134, %135 : vector<16x1xf32>
    %137 = vector.broadcast %129 : vector<16x1xf32> to vector<16x32xf32>
    %138 = arith.subf %121, %137 : vector<16x32xf32>
    %cst_54 = arith.constant 9.99999996E-13 : f32
    %139 = vector.broadcast %cst_54 : f32 to vector<16x1xf32>
    %140 = arith.addf %136, %139 : vector<16x1xf32>
    %141 = math.sqrt %140 : vector<16x1xf32>
    %142 = vector.broadcast %141 : vector<16x1xf32> to vector<16x32xf32>
    %143 = arith.divf %138, %142 : vector<16x32xf32>
    %144 = vector.broadcast %123 : vector<1x32xf32> to vector<16x32xf32>
    %145 = arith.mulf %143, %144 : vector<16x32xf32>
    %146 = vector.broadcast %125 : vector<1x32xf32> to vector<16x32xf32>
    %147 = arith.addf %145, %146 : vector<16x32xf32>
    %c0_55 = arith.constant 0 : index
    %c0_56 = arith.constant 0 : index
    %c0_57 = arith.constant 0 : index
    %148 = vector.load %arg12[%c0_55, %c0_56, %c0_57] : memref<2x32x128xf32, #tpu.memory_space<vmem>>, vector<1x32x128xf32>
    %149 = vector.shape_cast %148 : vector<1x32x128xf32> to vector<32x128xf32>
    %cst_58 = arith.constant dense<0.000000e+00> : vector<16x128xf32>
    %150 = tpu.matmul %147, %149, %cst_58 {dimension_numbers = #tpu.dot_dimension_numbers<[1], [0], [0], [1], [0, 0, 1, 1], [], []>} : vector<16x32xf32>, vector<32x128xf32>, vector<16x128xf32> -> vector<16x128xf32>
    %c0_59 = arith.constant 0 : index
    %c0_60 = arith.constant 0 : index
    %c0_61 = arith.constant 0 : index
    %151 = vector.load %arg13[%c0_59, %c0_60, %c0_61] : memref<2x1x128xf32, #tpu.memory_space<vmem>>, vector<1x1x128xf32>
    %152 = vector.shape_cast %151 : vector<1x1x128xf32> to vector<1x128xf32>
    %153 = vector.broadcast %152 : vector<1x128xf32> to vector<16x128xf32>
    %154 = arith.addf %150, %153 : vector<16x128xf32>
    %cst_62 = arith.constant 5.000000e-01 : f32
    %155 = vector.broadcast %cst_62 : f32 to vector<16x128xf32>
    %156 = arith.mulf %154, %155 : vector<16x128xf32>
    %cst_63 = arith.constant 1.41421354 : f32
    %157 = vector.broadcast %cst_63 : f32 to vector<16x128xf32>
    %158 = arith.divf %154, %157 : vector<16x128xf32>
    %159 = math.erf %158 : vector<16x128xf32>
    %cst_64 = arith.constant 1.000000e+00 : f32
    %160 = vector.broadcast %cst_64 : f32 to vector<16x128xf32>
    %161 = arith.addf %160, %159 : vector<16x128xf32>
    %162 = arith.mulf %156, %161 : vector<16x128xf32>
    %c0_65 = arith.constant 0 : index
    %c0_66 = arith.constant 0 : index
    %c0_67 = arith.constant 0 : index
    %163 = vector.load %arg14[%c0_65, %c0_66, %c0_67] : memref<2x128x32xf32, #tpu.memory_space<vmem>>, vector<1x128x32xf32>
    %164 = vector.shape_cast %163 : vector<1x128x32xf32> to vector<128x32xf32>
    %cst_68 = arith.constant dense<0.000000e+00> : vector<16x32xf32>
    %165 = tpu.matmul %162, %164, %cst_68 {dimension_numbers = #tpu.dot_dimension_numbers<[1], [0], [0], [1], [0, 0, 1, 1], [], []>} : vector<16x128xf32>, vector<128x32xf32>, vector<16x32xf32> -> vector<16x32xf32>
    %c0_69 = arith.constant 0 : index
    %c0_70 = arith.constant 0 : index
    %c0_71 = arith.constant 0 : index
    %166 = vector.load %arg15[%c0_69, %c0_70, %c0_71] : memref<2x1x32xf32, #tpu.memory_space<vmem>>, vector<1x1x32xf32>
    %167 = vector.shape_cast %166 : vector<1x1x32xf32> to vector<1x32xf32>
    %168 = vector.broadcast %167 : vector<1x32xf32> to vector<16x32xf32>
    %169 = arith.addf %165, %168 : vector<16x32xf32>
    %170 = arith.addf %169, %147 : vector<16x32xf32>
    %c0_72 = arith.constant 0 : index
    %c0_73 = arith.constant 0 : index
    %c0_74 = arith.constant 0 : index
    %171 = vector.load %arg16[%c0_72, %c0_73, %c0_74] : memref<2x1x32xf32, #tpu.memory_space<vmem>>, vector<1x1x32xf32>
    %172 = vector.shape_cast %171 : vector<1x1x32xf32> to vector<1x32xf32>
    %c0_75 = arith.constant 0 : index
    %c0_76 = arith.constant 0 : index
    %c0_77 = arith.constant 0 : index
    %173 = vector.load %arg17[%c0_75, %c0_76, %c0_77] : memref<2x1x32xf32, #tpu.memory_space<vmem>>, vector<1x1x32xf32>
    %174 = vector.shape_cast %173 : vector<1x1x32xf32> to vector<1x32xf32>
    %cst_78 = arith.constant dense<0.000000e+00> : vector<16xf32>
    %175 = vector.multi_reduction <add>, %170, %cst_78 [1] : vector<16x32xf32> to vector<16xf32>
    %176 = vector.shape_cast %175 : vector<16xf32> to vector<16x1xf32>
    %cst_79 = arith.constant 3.200000e+01 : f32
    %177 = vector.broadcast %cst_79 : f32 to vector<16x1xf32>
    %178 = arith.divf %176, %177 : vector<16x1xf32>
    %179 = vector.broadcast %178 : vector<16x1xf32> to vector<16x32xf32>
    %180 = arith.subf %170, %179 : vector<16x32xf32>
    %181 = arith.mulf %180, %180 : vector<16x32xf32>
    %cst_80 = arith.constant dense<0.000000e+00> : vector<16xf32>
    %182 = vector.multi_reduction <add>, %181, %cst_80 [1] : vector<16x32xf32> to vector<16xf32>
    %183 = vector.shape_cast %182 : vector<16xf32> to vector<16x1xf32>
    %cst_81 = arith.constant 3.200000e+01 : f32
    %184 = vector.broadcast %cst_81 : f32 to vector<16x1xf32>
    %185 = arith.divf %183, %184 : vector<16x1xf32>
    %186 = vector.broadcast %178 : vector<16x1xf32> to vector<16x32xf32>
    %187 = arith.subf %170, %186 : vector<16x32xf32>
    %cst_82 = arith.constant 9.99999996E-13 : f32
    %188 = vector.broadcast %cst_82 : f32 to vector<16x1xf32>
    %189 = arith.addf %185, %188 : vector<16x1xf32>
    %190 = math.sqrt %189 : vector<16x1xf32>
    %191 = vector.broadcast %190 : vector<16x1xf32> to vector<16x32xf32>
    %192 = arith.divf %187, %191 : vector<16x32xf32>
    %193 = vector.broadcast %172 : vector<1x32xf32> to vector<16x32xf32>
    %194 = arith.mulf %192, %193 : vector<16x32xf32>
    %195 = vector.broadcast %174 : vector<1x32xf32> to vector<16x32xf32>
    %196 = arith.addf %194, %195 : vector<16x32xf32>
    %c1 = arith.constant 1 : index
    %c0_83 = arith.constant 0 : index
    %c0_84 = arith.constant 0 : index
    %197 = vector.load %arg6[%c1, %c0_83, %c0_84] : memref<2x32x96xf32, #tpu.memory_space<vmem>>, vector<1x32x96xf32>
    %198 = vector.shape_cast %197 : vector<1x32x96xf32> to vector<32x96xf32>
    %cst_85 = arith.constant dense<0.000000e+00> : vector<16x96xf32>
    %199 = tpu.matmul %196, %198, %cst_85 {dimension_numbers = #tpu.dot_dimension_numbers<[1], [0], [0], [1], [0, 0, 1, 1], [], []>} : vector<16x32xf32>, vector<32x96xf32>, vector<16x96xf32> -> vector<16x96xf32>
    %c1_86 = arith.constant 1 : index
    %c0_87 = arith.constant 0 : index
    %c0_88 = arith.constant 0 : index
    %200 = vector.load %arg7[%c1_86, %c0_87, %c0_88] : memref<2x1x96xf32, #tpu.memory_space<vmem>>, vector<1x1x96xf32>
    %201 = vector.shape_cast %200 : vector<1x1x96xf32> to vector<1x96xf32>
    %202 = vector.broadcast %201 : vector<1x96xf32> to vector<16x96xf32>
    %203 = arith.addf %199, %202 : vector<16x96xf32>
    %204 = vector.extract_strided_slice %203 {offsets = [0, 0], sizes = [16, 32], strides = [1, 1]} : vector<16x96xf32> to vector<16x32xf32>
    %205 = vector.shape_cast %204 : vector<16x32xf32> to vector<2x8x32xf32>
    %206 = vector.extract_strided_slice %203 {offsets = [0, 32], sizes = [16, 32], strides = [1, 1]} : vector<16x96xf32> to vector<16x32xf32>
    %207 = vector.shape_cast %206 : vector<16x32xf32> to vector<2x8x32xf32>
    %208 = vector.extract_strided_slice %203 {offsets = [0, 64], sizes = [16, 32], strides = [1, 1]} : vector<16x96xf32> to vector<16x32xf32>
    %209 = vector.shape_cast %208 : vector<16x32xf32> to vector<2x8x32xf32>
    %c1_89 = arith.constant 1 : index
    %c0_90 = arith.constant 0 : index
    %c0_91 = arith.constant 0 : index
    %210 = vector.load %arg8[%c1_89, %c0_90, %c0_91] : memref<2x32x32xf32, #tpu.memory_space<vmem>>, vector<1x32x32xf32>
    %211 = vector.shape_cast %210 : vector<1x32x32xf32> to vector<32x32xf32>
    %cst_92 = arith.constant 0.000000e+00 : f32
    %212 = vector.broadcast %cst_92 : f32 to vector<16x32xf32>
    %213 = vector.extract_strided_slice %205 {offsets = [0, 0, 0], sizes = [2, 8, 16], strides = [1, 1, 1]} : vector<2x8x32xf32> to vector<2x8x16xf32>
    %214 = vector.extract_strided_slice %207 {offsets = [0, 0, 0], sizes = [2, 8, 16], strides = [1, 1, 1]} : vector<2x8x32xf32> to vector<2x8x16xf32>
    %215 = vector.extract_strided_slice %209 {offsets = [0, 0, 0], sizes = [2, 8, 16], strides = [1, 1, 1]} : vector<2x8x32xf32> to vector<2x8x16xf32>
    "tpu.trace_start"() <{level = 10 : i32, message = "bqd,bkd->bqk"}> : () -> ()
    %cst_93 = arith.constant dense<0.000000e+00> : vector<2x8x8xf32>
    %216 = tpu.matmul %213, %214, %cst_93 {dimension_numbers = #tpu.dot_dimension_numbers<[2], [2], [1], [1], [0, 0, 0, 1, 1, 1], [0], [0]>} : vector<2x8x16xf32>, vector<2x8x16xf32>, vector<2x8x8xf32> -> vector<2x8x8xf32>
    "tpu.trace_stop"() : () -> ()
    %cst_94 = arith.constant 2.500000e-01 : f32
    %217 = vector.broadcast %cst_94 : f32 to vector<2x8x8xf32>
    %218 = arith.mulf %216, %217 : vector<2x8x8xf32>
    %219 = arith.addf %218, %18 : vector<2x8x8xf32>
    %cst_95 = arith.constant dense<0xFF800000> : vector<2x8xf32>
    %220 = vector.multi_reduction <maximumf>, %219, %cst_95 [2] : vector<2x8x8xf32> to vector<2x8xf32>
    %221 = vector.shape_cast %220 : vector<2x8xf32> to vector<2x8x1xf32>
    %222 = vector.broadcast %221 : vector<2x8x1xf32> to vector<2x8x8xf32>
    %223 = arith.subf %219, %222 : vector<2x8x8xf32>
    %224 = math.exp %223 : vector<2x8x8xf32>
    %cst_96 = arith.constant dense<0.000000e+00> : vector<2x8xf32>
    %225 = vector.multi_reduction <add>, %224, %cst_96 [2] : vector<2x8x8xf32> to vector<2x8xf32>
    %226 = vector.shape_cast %225 : vector<2x8xf32> to vector<2x8x1xf32>
    %227 = tpu.reciprocal %226 {approx = true} : vector<2x8x1xf32> -> vector<2x8x1xf32>
    %228 = vector.broadcast %227 : vector<2x8x1xf32> to vector<2x8x8xf32>
    %229 = arith.mulf %224, %228 : vector<2x8x8xf32>
    "tpu.trace_start"() <{level = 10 : i32, message = "bqk,bkd->bqd"}> : () -> ()
    %cst_97 = arith.constant dense<0.000000e+00> : vector<2x8x16xf32>
    %230 = tpu.matmul %229, %215, %cst_97 {dimension_numbers = #tpu.dot_dimension_numbers<[2], [1], [1], [2], [0, 0, 0, 1, 1, 2], [0], [0]>} : vector<2x8x8xf32>, vector<2x8x16xf32>, vector<2x8x16xf32> -> vector<2x8x16xf32>
    "tpu.trace_stop"() : () -> ()
    %231 = vector.shape_cast %230 : vector<2x8x16xf32> to vector<16x16xf32>
    %232 = vector.extract_strided_slice %211 {offsets = [0, 0], sizes = [16, 32], strides = [1, 1]} : vector<32x32xf32> to vector<16x32xf32>
    %cst_98 = arith.constant dense<0.000000e+00> : vector<16x32xf32>
    %233 = tpu.matmul %231, %232, %cst_98 {dimension_numbers = #tpu.dot_dimension_numbers<[1], [0], [0], [1], [0, 0, 1, 1], [], []>} : vector<16x16xf32>, vector<16x32xf32>, vector<16x32xf32> -> vector<16x32xf32>
    %234 = arith.addf %212, %233 : vector<16x32xf32>
    %235 = vector.extract_strided_slice %205 {offsets = [0, 0, 16], sizes = [2, 8, 16], strides = [1, 1, 1]} : vector<2x8x32xf32> to vector<2x8x16xf32>
    %236 = vector.extract_strided_slice %207 {offsets = [0, 0, 16], sizes = [2, 8, 16], strides = [1, 1, 1]} : vector<2x8x32xf32> to vector<2x8x16xf32>
    %237 = vector.extract_strided_slice %209 {offsets = [0, 0, 16], sizes = [2, 8, 16], strides = [1, 1, 1]} : vector<2x8x32xf32> to vector<2x8x16xf32>
    "tpu.trace_start"() <{level = 10 : i32, message = "bqd,bkd->bqk"}> : () -> ()
    %cst_99 = arith.constant dense<0.000000e+00> : vector<2x8x8xf32>
    %238 = tpu.matmul %235, %236, %cst_99 {dimension_numbers = #tpu.dot_dimension_numbers<[2], [2], [1], [1], [0, 0, 0, 1, 1, 1], [0], [0]>} : vector<2x8x16xf32>, vector<2x8x16xf32>, vector<2x8x8xf32> -> vector<2x8x8xf32>
    "tpu.trace_stop"() : () -> ()
    %cst_100 = arith.constant 2.500000e-01 : f32
    %239 = vector.broadcast %cst_100 : f32 to vector<2x8x8xf32>
    %240 = arith.mulf %238, %239 : vector<2x8x8xf32>
    %241 = arith.addf %240, %18 : vector<2x8x8xf32>
    %cst_101 = arith.constant dense<0xFF800000> : vector<2x8xf32>
    %242 = vector.multi_reduction <maximumf>, %241, %cst_101 [2] : vector<2x8x8xf32> to vector<2x8xf32>
    %243 = vector.shape_cast %242 : vector<2x8xf32> to vector<2x8x1xf32>
    %244 = vector.broadcast %243 : vector<2x8x1xf32> to vector<2x8x8xf32>
    %245 = arith.subf %241, %244 : vector<2x8x8xf32>
    %246 = math.exp %245 : vector<2x8x8xf32>
    %cst_102 = arith.constant dense<0.000000e+00> : vector<2x8xf32>
    %247 = vector.multi_reduction <add>, %246, %cst_102 [2] : vector<2x8x8xf32> to vector<2x8xf32>
    %248 = vector.shape_cast %247 : vector<2x8xf32> to vector<2x8x1xf32>
    %249 = tpu.reciprocal %248 {approx = true} : vector<2x8x1xf32> -> vector<2x8x1xf32>
    %250 = vector.broadcast %249 : vector<2x8x1xf32> to vector<2x8x8xf32>
    %251 = arith.mulf %246, %250 : vector<2x8x8xf32>
    "tpu.trace_start"() <{level = 10 : i32, message = "bqk,bkd->bqd"}> : () -> ()
    %cst_103 = arith.constant dense<0.000000e+00> : vector<2x8x16xf32>
    %252 = tpu.matmul %251, %237, %cst_103 {dimension_numbers = #tpu.dot_dimension_numbers<[2], [1], [1], [2], [0, 0, 0, 1, 1, 2], [0], [0]>} : vector<2x8x8xf32>, vector<2x8x16xf32>, vector<2x8x16xf32> -> vector<2x8x16xf32>
    "tpu.trace_stop"() : () -> ()
    %253 = vector.shape_cast %252 : vector<2x8x16xf32> to vector<16x16xf32>
    %254 = vector.extract_strided_slice %211 {offsets = [16, 0], sizes = [16, 32], strides = [1, 1]} : vector<32x32xf32> to vector<16x32xf32>
    %cst_104 = arith.constant dense<0.000000e+00> : vector<16x32xf32>
    %255 = tpu.matmul %253, %254, %cst_104 {dimension_numbers = #tpu.dot_dimension_numbers<[1], [0], [0], [1], [0, 0, 1, 1], [], []>} : vector<16x16xf32>, vector<16x32xf32>, vector<16x32xf32> -> vector<16x32xf32>
    %256 = arith.addf %234, %255 : vector<16x32xf32>
    %c1_105 = arith.constant 1 : index
    %c0_106 = arith.constant 0 : index
    %c0_107 = arith.constant 0 : index
    %257 = vector.load %arg9[%c1_105, %c0_106, %c0_107] : memref<2x1x32xf32, #tpu.memory_space<vmem>>, vector<1x1x32xf32>
    %258 = vector.shape_cast %257 : vector<1x1x32xf32> to vector<1x32xf32>
    %259 = vector.broadcast %258 : vector<1x32xf32> to vector<16x32xf32>
    %260 = arith.addf %256, %259 : vector<16x32xf32>
    %261 = arith.addf %260, %196 : vector<16x32xf32>
    %c1_108 = arith.constant 1 : index
    %c0_109 = arith.constant 0 : index
    %c0_110 = arith.constant 0 : index
    %262 = vector.load %arg10[%c1_108, %c0_109, %c0_110] : memref<2x1x32xf32, #tpu.memory_space<vmem>>, vector<1x1x32xf32>
    %263 = vector.shape_cast %262 : vector<1x1x32xf32> to vector<1x32xf32>
    %c1_111 = arith.constant 1 : index
    %c0_112 = arith.constant 0 : index
    %c0_113 = arith.constant 0 : index
    %264 = vector.load %arg11[%c1_111, %c0_112, %c0_113] : memref<2x1x32xf32, #tpu.memory_space<vmem>>, vector<1x1x32xf32>
    %265 = vector.shape_cast %264 : vector<1x1x32xf32> to vector<1x32xf32>
    %cst_114 = arith.constant dense<0.000000e+00> : vector<16xf32>
    %266 = vector.multi_reduction <add>, %261, %cst_114 [1] : vector<16x32xf32> to vector<16xf32>
    %267 = vector.shape_cast %266 : vector<16xf32> to vector<16x1xf32>
    %cst_115 = arith.constant 3.200000e+01 : f32
    %268 = vector.broadcast %cst_115 : f32 to vector<16x1xf32>
    %269 = arith.divf %267, %268 : vector<16x1xf32>
    %270 = vector.broadcast %269 : vector<16x1xf32> to vector<16x32xf32>
    %271 = arith.subf %261, %270 : vector<16x32xf32>
    %272 = arith.mulf %271, %271 : vector<16x32xf32>
    %cst_116 = arith.constant dense<0.000000e+00> : vector<16xf32>
    %273 = vector.multi_reduction <add>, %272, %cst_116 [1] : vector<16x32xf32> to vector<16xf32>
    %274 = vector.shape_cast %273 : vector<16xf32> to vector<16x1xf32>
    %cst_117 = arith.constant 3.200000e+01 : f32
    %275 = vector.broadcast %cst_117 : f32 to vector<16x1xf32>
    %276 = arith.divf %274, %275 : vector<16x1xf32>
    %277 = vector.broadcast %269 : vector<16x1xf32> to vector<16x32xf32>
    %278 = arith.subf %261, %277 : vector<16x32xf32>
    %cst_118 = arith.constant 9.99999996E-13 : f32
    %279 = vector.broadcast %cst_118 : f32 to vector<16x1xf32>
    %280 = arith.addf %276, %279 : vector<16x1xf32>
    %281 = math.sqrt %280 : vector<16x1xf32>
    %282 = vector.broadcast %281 : vector<16x1xf32> to vector<16x32xf32>
    %283 = arith.divf %278, %282 : vector<16x32xf32>
    %284 = vector.broadcast %263 : vector<1x32xf32> to vector<16x32xf32>
    %285 = arith.mulf %283, %284 : vector<16x32xf32>
    %286 = vector.broadcast %265 : vector<1x32xf32> to vector<16x32xf32>
    %287 = arith.addf %285, %286 : vector<16x32xf32>
    %c1_119 = arith.constant 1 : index
    %c0_120 = arith.constant 0 : index
    %c0_121 = arith.constant 0 : index
    %288 = vector.load %arg12[%c1_119, %c0_120, %c0_121] : memref<2x32x128xf32, #tpu.memory_space<vmem>>, vector<1x32x128xf32>
    %289 = vector.shape_cast %288 : vector<1x32x128xf32> to vector<32x128xf32>
    %cst_122 = arith.constant dense<0.000000e+00> : vector<16x128xf32>
    %290 = tpu.matmul %287, %289, %cst_122 {dimension_numbers = #tpu.dot_dimension_numbers<[1], [0], [0], [1], [0, 0, 1, 1], [], []>} : vector<16x32xf32>, vector<32x128xf32>, vector<16x128xf32> -> vector<16x128xf32>
    %c1_123 = arith.constant 1 : index
    %c0_124 = arith.constant 0 : index
    %c0_125 = arith.constant 0 : index
    %291 = vector.load %arg13[%c1_123, %c0_124, %c0_125] : memref<2x1x128xf32, #tpu.memory_space<vmem>>, vector<1x1x128xf32>
    %292 = vector.shape_cast %291 : vector<1x1x128xf32> to vector<1x128xf32>
    %293 = vector.broadcast %292 : vector<1x128xf32> to vector<16x128xf32>
    %294 = arith.addf %290, %293 : vector<16x128xf32>
    %cst_126 = arith.constant 5.000000e-01 : f32
    %295 = vector.broadcast %cst_126 : f32 to vector<16x128xf32>
    %296 = arith.mulf %294, %295 : vector<16x128xf32>
    %cst_127 = arith.constant 1.41421354 : f32
    %297 = vector.broadcast %cst_127 : f32 to vector<16x128xf32>
    %298 = arith.divf %294, %297 : vector<16x128xf32>
    %299 = math.erf %298 : vector<16x128xf32>
    %cst_128 = arith.constant 1.000000e+00 : f32
    %300 = vector.broadcast %cst_128 : f32 to vector<16x128xf32>
    %301 = arith.addf %300, %299 : vector<16x128xf32>
    %302 = arith.mulf %296, %301 : vector<16x128xf32>
    %c1_129 = arith.constant 1 : index
    %c0_130 = arith.constant 0 : index
    %c0_131 = arith.constant 0 : index
    %303 = vector.load %arg14[%c1_129, %c0_130, %c0_131] : memref<2x128x32xf32, #tpu.memory_space<vmem>>, vector<1x128x32xf32>
    %304 = vector.shape_cast %303 : vector<1x128x32xf32> to vector<128x32xf32>
    %cst_132 = arith.constant dense<0.000000e+00> : vector<16x32xf32>
    %305 = tpu.matmul %302, %304, %cst_132 {dimension_numbers = #tpu.dot_dimension_numbers<[1], [0], [0], [1], [0, 0, 1, 1], [], []>} : vector<16x128xf32>, vector<128x32xf32>, vector<16x32xf32> -> vector<16x32xf32>
    %c1_133 = arith.constant 1 : index
    %c0_134 = arith.constant 0 : index
    %c0_135 = arith.constant 0 : index
    %306 = vector.load %arg15[%c1_133, %c0_134, %c0_135] : memref<2x1x32xf32, #tpu.memory_space<vmem>>, vector<1x1x32xf32>
    %307 = vector.shape_cast %306 : vector<1x1x32xf32> to vector<1x32xf32>
    %308 = vector.broadcast %307 : vector<1x32xf32> to vector<16x32xf32>
    %309 = arith.addf %305, %308 : vector<16x32xf32>
    %310 = arith.addf %309, %287 : vector<16x32xf32>
    %c1_136 = arith.constant 1 : index
    %c0_137 = arith.constant 0 : index
    %c0_138 = arith.constant 0 : index
    %311 = vector.load %arg16[%c1_136, %c0_137, %c0_138] : memref<2x1x32xf32, #tpu.memory_space<vmem>>, vector<1x1x32xf32>
    %312 = vector.shape_cast %311 : vector<1x1x32xf32> to vector<1x32xf32>
    %c1_139 = arith.constant 1 : index
    %c0_140 = arith.constant 0 : index
    %c0_141 = arith.constant 0 : index
    %313 = vector.load %arg17[%c1_139, %c0_140, %c0_141] : memref<2x1x32xf32, #tpu.memory_space<vmem>>, vector<1x1x32xf32>
    %314 = vector.shape_cast %313 : vector<1x1x32xf32> to vector<1x32xf32>
    %cst_142 = arith.constant dense<0.000000e+00> : vector<16xf32>
    %315 = vector.multi_reduction <add>, %310, %cst_142 [1] : vector<16x32xf32> to vector<16xf32>
    %316 = vector.shape_cast %315 : vector<16xf32> to vector<16x1xf32>
    %cst_143 = arith.constant 3.200000e+01 : f32
    %317 = vector.broadcast %cst_143 : f32 to vector<16x1xf32>
    %318 = arith.divf %316, %317 : vector<16x1xf32>
    %319 = vector.broadcast %318 : vector<16x1xf32> to vector<16x32xf32>
    %320 = arith.subf %310, %319 : vector<16x32xf32>
    %321 = arith.mulf %320, %320 : vector<16x32xf32>
    %cst_144 = arith.constant dense<0.000000e+00> : vector<16xf32>
    %322 = vector.multi_reduction <add>, %321, %cst_144 [1] : vector<16x32xf32> to vector<16xf32>
    %323 = vector.shape_cast %322 : vector<16xf32> to vector<16x1xf32>
    %cst_145 = arith.constant 3.200000e+01 : f32
    %324 = vector.broadcast %cst_145 : f32 to vector<16x1xf32>
    %325 = arith.divf %323, %324 : vector<16x1xf32>
    %326 = vector.broadcast %318 : vector<16x1xf32> to vector<16x32xf32>
    %327 = arith.subf %310, %326 : vector<16x32xf32>
    %cst_146 = arith.constant 9.99999996E-13 : f32
    %328 = vector.broadcast %cst_146 : f32 to vector<16x1xf32>
    %329 = arith.addf %325, %328 : vector<16x1xf32>
    %330 = math.sqrt %329 : vector<16x1xf32>
    %331 = vector.broadcast %330 : vector<16x1xf32> to vector<16x32xf32>
    %332 = arith.divf %327, %331 : vector<16x32xf32>
    %333 = vector.broadcast %312 : vector<1x32xf32> to vector<16x32xf32>
    %334 = arith.mulf %332, %333 : vector<16x32xf32>
    %335 = vector.broadcast %314 : vector<1x32xf32> to vector<16x32xf32>
    %336 = arith.addf %334, %335 : vector<16x32xf32>
    %c0_147 = arith.constant 0 : index
    %c0_148 = arith.constant 0 : index
    %337 = vector.load %arg18[%c0_147, %c0_148] : memref<16x32xf32, #tpu.memory_space<vmem>>, vector<16x32xf32>
    tpu.vector_store %arg18[%c0_147, %c0_148], %336 {strides = array<i32>} : memref<16x32xf32, #tpu.memory_space<vmem>>, vector<16x32xf32>,
    return
  }
}

</mosaic_0001>

<bundles_post_ra>
// kernel: forward.1
= control target key start
LH: loop header
LB: loop body
LE: loop exit
PB: predicated region body
PF: predicated region fallthrough
CT: control target
= control target key end

     0   :  { %s4166_s0 = inlined_call_operand.vmem [shape: s32[2,8], index: 0, kind: input, shape index: {}]   ;;  %s4167_s1 = inlined_call_operand.vmem [shape: s32[16,1], index: 1, kind: input, shape index: {}]   ;;  %s4168_s2 = inlined_call_operand.vmem [shape: f32[100,32], index: 2, kind: input, shape index: {}]   ;;  %s4169_s3 = inlined_call_operand.vmem [shape: f32[8,32], index: 3, kind: input, shape index: {}]   ;;  %s4170_s4 = inlined_call_operand.vmem [shape: f32[1,32], index: 4, kind: input, shape index: {}]   ;;  %s4171_s5 = inlined_call_operand.vmem [shape: f32[1,32], index: 5, kind: input, shape index: {}]   ;;  %s4172_s6 = inlined_call_operand.vmem [shape: f32[2,32,96], index: 6, kind: input, shape index: {}]   ;;  %s4173_s7 = inlined_call_operand.vmem [shape: f32[2,1,96], index: 7, kind: input, shape index: {}]   ;;  %s4174_s8 = inlined_call_operand.vmem [shape: f32[2,32,32], index: 8, kind: input, shape index: {}]   ;;  %s4175_s9 = inlined_call_operand.vmem [shape: f32[2,1,32], index: 9, kind: input, shape index: {}]   ;;  %s4176_s10 = inlined_call_operand.vmem [shape: f32[2,1,32], index: 10, kind: input, shape index: {}]   ;;  %s4177_s11 = inlined_call_operand.vmem [shape: f32[2,1,32], index: 11, kind: input, shape index: {}]   ;;  %s4178_s12 = inlined_call_operand.vmem [shape: f32[2,32,128], index: 12, kind: input, shape index: {}]   ;;  %s4179_s13 = inlined_call_operand.vmem [shape: f32[2,1,128], index: 13, kind: input, shape index: {}]   ;;  %s4180_s14 = inlined_call_operand.vmem [shape: f32[2,128,32], index: 14, kind: input, shape index: {}]   ;;  %s4181_s15 = inlined_call_operand.vmem [shape: f32[2,1,32], index: 15, kind: input, shape index: {}]   ;;  %s4182_s16 = inlined_call_operand.vmem [shape: f32[2,1,32], index: 16, kind: input, shape index: {}]   ;;  %s4183_s17 = inlined_call_operand.vmem [shape: f32[2,1,32], index: 17, kind: input, shape index: {}]   ;;  %s4184_s18 = inlined_call_operand.hbm [shape: f32[16,32], index: 18, kind: output, shape index: {}]  }
   0x1   :  { %4188 = sst [smem:[#allocation5_spill]] %s4166_s0 }
   0x2   :  { %4189 = sst [smem:[#allocation6_spill]] %s4167_s1 }
   0x3   :  { %4190 = sst [smem:[#allocation7_spill]] %s4168_s2 }
   0x4   :  { %4191 = sst [smem:[#allocation8_spill]] %s4179_s13 }
   0x5   :  { %s4192_s29 = sld [smem:[#allocation6_spill]]  ;;  %s4193_s13 = sld [smem:[#allocation7_spill]]  ;;  %v3557_v2 = vmov 0   ;;  %v3558_v8 = vmov 0.0  }
   0x6   :  { %3452 = vset.pattern.permute.xlu0 %v3557_v2  ;;  %3099 = vmatprep.subr.mxu1 %v3558_v8 }
   0xb   :  { %v110_v0 = vld [vmem:[%s4192_s29] sm:$0xff]  ;;  %v125_v3 = vld [vmem:[%s4193_s13 + $0x8] sm:$0xff]  ;;  %v126_v4 = vld [vmem:[%s4193_s13 + $0x10] sm:$0xff] }
   0xc   :  { %v124_v1 = vld [vmem:[%s4193_s13] sm:$0xff]  ;;  %v127_v5 = vld [vmem:[%s4193_s13 + $0x18] sm:$0xff]  ;;  %113 = vperm.xlu0 %3452, %v110_v0   ;;  %v111_v9 = vld [vmem:[%s4192_s29 + $0x8] sm:$0xff] }
   0xd   :  { %v3300_v6 = vpack.c.bf16 %v125_v3, %v124_v1  ;;  %v3304_v7 = vpack.c.bf16 %v127_v5, %v126_v4  ;;  %v128_v10 = vld [vmem:[%s4193_s13 + $0x20] sm:$0xff]  ;;  %v129_v11 = vld [vmem:[%s4193_s13 + $0x28] sm:$0xff] }
   0xf   :  { %3301 = vmatprep.subr.bf16.mxu0 %v3300_v6 }
  0x10   :  { %23 = vsyncpa [#allocation3], 0  ;;  %3303 = vmatpush3.bf16.msra.mxu0 %v3300_v6  ;;  %116 = vperm.xlu0 %3452, %v111_v9   ;;  %v3308_v12 = vpack.c.bf16 %v129_v11, %v128_v10  ;;  %v130_v13 = vld [vmem:[%s4193_s13 + $0x30] sm:$0xff]  ;;  %v131_v14 = vld [vmem:[%s4193_s13 + $0x38] sm:$0xff]  ;;  %vm144_vm0 = vcmask 1043456   ;;  %v64_v23 = vlaneseq  ;;  %vm137_vm1 = vcmask 818176  }
  0x11   :  { %3305 = vmatprep.subr.bf16.mxu0 %v3304_v7  ;;  %v3312_v15 = vpack.c.bf16 %v131_v14, %v130_v13  ;;  %v132_v16 = vld [vmem:[%s4193_s13 + $0x40] sm:$0xff]  ;;  %v133_v17 = vld [vmem:[%s4193_s13 + $0x48] sm:$0xff]  ;;  %v134_v19 = vld [vmem:[%s4193_s13 + $0x50] sm:$0xff]  ;;  %vm228_vm4 = vcmask 261120   ;;  %vm3559_vm9 = vmmov 0   ;;  %s3560_s25 = smov 96  }
  0x12   :  { %v3316_v18 = vpack.c.bf16 %v133_v17, %v132_v16  ;;  %v135_v20 = vld [vmem:[%s4193_s13 + $0x58] sm:$0xff]  ;;  %v136_v22 = vld [vmem:[%s4193_s13 + $0x60] sm:$0xf]  ;;  %v3711_v24 = vand.u32 127, %v64_v23  ;;  %v287_v47 = vld [vmem:[%s4172_s6 + $0x8] sm:$0xff]  ;;  %3101 = vmatprep.mubr.msk.f32.mxu1 %vm3559_vm9, %v3558_v8  ;;  %vm385_vm10 = vcmask 130048  }
  0x13   :  { %v3320_v21 = vpack.c.bf16 %v135_v20, %v134_v19  ;;  %v223_v29 = vld [vmem:[%s4169_s3] sm:$0xff]  ;;  %v288_v48 = vld [vmem:[%s4172_s6 + $0x10] sm:$0xff]  ;;  %v289_v50 = vld [vmem:[%s4172_s6 + $0x18] sm:$0xff]  ;;  %s4194_s13 = sld [smem:[#allocation5_spill]]  ;;  %vm541_vm13 = vcmask 64512   ;;  %s3562_s28 = smov 64  }
  0x14   :  { %3307 = vmatpush3.bf16.msra.mxu0 %v3304_v7  ;;  %v286_v46 = vld [vmem:[%s4172_s6] sm:$0xff]  ;;  %v3328_v51 = vpack.c.bf16 %v289_v50, %v288_v48  ;;  %s3563_s3 = smov 80   ;;  %s3564_s30 = smov 112  }
  0x15   :  { %3309 = vmatprep.subr.bf16.mxu0 %v3308_v12  ;;  %v3324_v49 = vpack.c.bf16 %v287_v47, %v286_v46  ;;  %v2832_v5 = vld [vmem:[%s4170_s4] ss:$0 sm:$0xff]  ;;  %s3565_s0 = smov 48   ;;  %s4195_s19 = sld [smem:[#allocation8_spill]] }
  0x16   :  { %v2833_v7 = vld [vmem:[%s4171_s5] ss:$0 sm:$0xff] }
  0x18   :  { %3311 = vmatpush3.bf16.msra.mxu0 %v3308_v12 }
  0x19   :  { %3313 = vmatprep.subr.bf16.mxu0 %v3312_v15 }
  0x1c   :  { %3315 = vmatpush3.bf16.msra.mxu0 %v3312_v15  ;;  %v2834_v15 = vld [vmem:[%s4173_s7] ss:$0 sm:$0xff] }
  0x1d   :  { %3317 = vmatprep.subr.bf16.mxu0 %v3316_v18 }
  0x20   :  { %3319 = vmatpush3.bf16.msra.mxu0 %v3316_v18 }
  0x21   :  { %3321 = vmatprep.subr.bf16.mxu0 %v3320_v21 }
  0x24   :  { %3323 = vmatpush3.bf16.msra.mxu0 %v3320_v21 }
  0x25   :  { %3073 = vmatprep.subr.msk.mxu0 %vm144_vm0, %v136_v22 }
  0x28   :  { %3074 = vmatpush3.msk.msra.mxu0 %vm144_vm0, %v136_v22  ;;  %v3561_v22 = vmov 1966171168  }
  0x29   :  { %3325 = vmatprep.subr.bf16.mxu0 %v3324_v49 }
  0x8b   :  { %v114_v25 = vpop.permute.xlu0 %113 }
  0x8c   :  { %vm118_vm2 = vcmp.eq.s32.totalorder %v114_v25, %v3711_v24  ;;  %v73_v25 = vunpack.c.l.s4 %v3561_v22 }
  0x8d   :  { %v2827_v26 = vsel %vm118_vm2, 1.0, %v3558_v8 }
  0x8e   :  { %3075 = vmatprep.mubr.msk.f32.mxu0 %vm137_vm1, %v2827_v26  ;;  %v60_v26 = vld [vmem:[%s4194_s13] sm:$0x3] }
  0x8f   :  { %v117_v27 = vpop.permute.xlu0 %116  ;;  %vm61_vm11 = vcmp.gt.s32.totalorder %v60_v26, 0 }
  0x90   :  { %vm119_vm3 = vcmp.eq.s32.totalorder %v117_v27, %v3711_v24  ;;  %v65_v27 = vshrl.u32 %v64_v23, 7 }
  0x91   :  { %v2828_v28 = vsel %vm119_vm3, 1.0, %v3558_v8 }
  0x92   :  { %3076 = vmatmul.mubr.msk.f32.vlgmr.msra.gmra.mrb[0].mxu0 %vm137_vm1, %v2828_v28  ;;  %v74_v28 = vunpack.c.0.s8 %v73_v25  ;;  %vm68_vm12 = vcmp.le.s32.totalorder %v3711_v24, %v65_v27 }
  0x93   :  { %3327 = vmatpush3.bf16.msra.mxu0 %v3324_v49 }
  0x94   :  { %3329 = vmatprep.subr.bf16.mxu0 %v3328_v51 }
  0x97   :  { %3331 = vmatpush3.bf16.msra.mxu0 %v3328_v51 }
  0x98   :  { %3089 = vmatprep.subr.mxu0 %v3558_v8 }
 0x165   :  { %v3077_v30 = vpop.f32.mrb[0].mxu0 }
 0x166   :  { %v214_v31 = vpop.f32.mrb[1].mxu0  ;;  %v225_v33 = vadd.f32 %v3077_v30, %v223_v29  ;;  %v2825_v30 = vsel %vm61_vm11, 1.0, %v3558_v8 }
 0x167   :  { %v224_v32 = vadd.f32 %v223_v29, %v214_v31  ;;  %v77_v29 = vsub.s32 %v74_v28, %v65_v27 }
 0x168   :  { %v232_v35 = vsel %vm228_vm4, %v225_v33, 0.0 }
 0x169   :  { %v229_v34 = vsel %vm228_vm4, %v224_v32, 0.0  ;;  %v78_v31 = vrot.slane %v2825_v30, %v77_v29 }
 0x16a   :  { %230 = vadd.xlane.f32.xlu1 %v229_v34 }
 0x16b   :  { %v79_v34 = vcombine.high %v78_v31, %v78_v31 }
 0x16e   :  { %233 = vadd.xlane.f32.xlu1 %v232_v35 }
 0x1f7   :  { %v231_v36 = vpop.xlane.xlu1 %230 }
 0x1f8   :  { %v236_v37 = vmul.f32 0.03125, %v231_v36  ;;  %v93_v36 = vrot.slane %v79_v34, %v77_v29 }
 0x1fa   :  { %v238_v38 = vsub.f32 %v224_v32, %v236_v37  ;;  %v96_v32 = vsub.s32 0, %v65_v27  ;;  %v2826_v37 = vsel %vm68_vm12, 1.0, %v3558_v8 }
 0x1fb   :  { %v234_v39 = vpop.xlane.xlu1 %233 }
 0x1fc   :  { %v237_v40 = vmul.f32 0.03125, %v234_v39  ;;  %v240_v41 = vmul.f32 %v238_v38, %v238_v38  ;;  %v101_v39 = vrot.slane %v93_v36, %v96_v32 }
 0x1fe   :  { %v239_v42 = vsub.f32 %v225_v33, %v237_v40  ;;  %v242_v43 = vsel %vm228_vm4, %v240_v41, 0.0  ;;  %v86_v33 = vrot.slane %v78_v31, %v77_v29  ;;  %v105_v41 = vmul.f32 %v2826_v37, %v101_v39 }
 0x1ff   :  { %243 = vadd.xlane.f32.xlu0 %v242_v43 }
 0x200   :  { %v241_v44 = vmul.f32 %v239_v42, %v239_v42  ;;  %v97_v35 = vrot.slane %v86_v33, %v96_v32 }
 0x202   :  { %v245_v45 = vsel %vm228_vm4, %v241_v44, 0.0 }
 0x203   :  { %246 = vadd.xlane.f32.xlu1 %v245_v45 }
 0x28c   :  { %v244_v52 = vpop.xlane.xlu0 %243 }
 0x28d   :  { %v248_v53 = vmul.f32 0.03125, %v244_v52 }
 0x28f   :  { %v250_v54 = vadd.f32 1e-12, %v248_v53 }
 0x290   :  { %v247_v55 = vpop.xlane.xlu1 %246 }
 0x291   :  { %3453 = vrsqrt.f32 %v250_v54  ;;  %v249_v56 = vmul.f32 0.03125, %v247_v55  ;;  %vm254_vm5 = vcmp.eq.f32.partialorder %v250_v54, inf  ;;  %v257_v60 = vand.u32 2147483648, %v250_v54 }
 0x292   :  { %vm256_vm6 = vcmp.eq.f32.partialorder %v250_v54, 0.0 }
 0x293   :  { %v251_v57 = vadd.f32 1e-12, %v249_v56 }
 0x295   :  { %3455 = vrsqrt.f32 %v251_v57  ;;  %vm261_vm7 = vcmp.eq.f32.partialorder %v251_v57, inf  ;;  %v264_v1 = vand.u32 2147483648, %v251_v57  ;;  %vm263_vm8 = vcmp.eq.f32.partialorder %v251_v57, 0.0 }
 0x29b   :  { %v3454_v58 = vpop.eup %3453 }
 0x29c   :  { %v253_v59 = vmul.f32 %v3454_v58, %v250_v54 }
 0x29e   :  { %v255_v61 = vsel %vm254_vm5, %v250_v54, %v253_v59 }
 0x29f   :  { %v258_v62 = vsel %vm256_vm6, %v257_v60, %v255_v61  ;;  %v3456_v63 = vpop.eup %3455 }
 0x2a0   :  { %3457 = vrcp.f32 %v258_v62  ;;  %v260_v0 = vmul.f32 %v3456_v63, %v251_v57 }
 0x2a2   :  { %v262_v2 = vsel %vm261_vm7, %v251_v57, %v260_v0 }
 0x2a3   :  { %v265_v3 = vsel %vm263_vm8, %v264_v1, %v262_v2 }
 0x2a4   :  { %3459 = vrcp.f32 %v265_v3 }
 0x2aa   :  { %v3458_v4 = vpop.eup %3457 }
 0x2ab   :  { %v267_v6 = vmul.f32 %v3458_v4, %v238_v38  ;;  %v104_v38 = vmul.f32 %v2826_v37, %v97_v35 }
 0x2ad   :  { %v276_v9 = vmul.f32 %v2832_v5, %v267_v6  ;;  %v106_v40 = vsub.f32 1.0, %v104_v38 }
 0x2ae   :  { %v3460_v10 = vpop.eup %3459 }
 0x2af   :  { %v3743_v11 = vadd.f32 %v2833_v7, %v276_v9  ;;  %v269_v12 = vmul.f32 %v3460_v10, %v239_v42  ;;  %v3785_v23 = vmul.f32 -10000.0, %v106_v40  ;;  %v107_v42 = vsub.f32 1.0, %v105_v41 }
 0x2b1   :  { %3086 = vmatprep.mubr.msk.f32.mxu0 %vm228_vm4, %v3743_v11  ;;  %v277_v13 = vmul.f32 %v2832_v5, %v269_v12  ;;  %v3788_v47 = vmul.f32 -10000.0, %v107_v42 }
 0x2b3   :  { %v3747_v14 = vadd.f32 %v2833_v7, %v277_v13 }
 0x2b5   :  { %3087 = vmatmul.mubr.msk.f32.vlgmr.msra.gmra.mrb[2].mxu0 %vm228_vm4, %v3747_v14 }
 0x2b6   :  { %3091 = vmatprep.mubr.msk.f32.mxu0 %vm3559_vm9, %v3558_v8 }
 0x388   :  { %v3088_v16 = vpop.f32.mrb[2].mxu0 }
 0x389   :  { %v369_v17 = vpop.f32.mrb[3].mxu0  ;;  %v3762_v19 = vadd.f32 %v3088_v16, %v2834_v15 }
 0x38a   :  { %v3758_v18 = vadd.f32 %v2834_v15, %v369_v17 }
 0x38c   :  { %383 = vrot.lane.b32.xlu1 %v3758_v18, %s3560_s25 }
 0x390   :  { %461 = vrot.lane.b32.xlu1 %v3762_v19, %s3560_s25 }
 0x3fe   :  { %v384_v20 = vpop.permute.xlu1 %383 }
 0x3ff   :  { %3090 = vmatpush3.xpose.msk.msra.mxu0 %vm385_vm10, %v384_v20 }
 0x400   :  { %3094 = vmatprep.subr.mxu0 %v3558_v8 }
 0x402   :  { %3092 = vmatmul.mubr.msk.f32.vlgmr.msra.gmra.mrb[4].mxu0 %vm385_vm10, %v3758_v18  ;;  %v462_v21 = vpop.permute.xlu1 %461 }
 0x403   :  { %3095 = vmatpush3.xpose.msk.msra.mxu0 %vm385_vm10, %v462_v21  ;;  %3096 = vmatprep.mubr.msk.f32.mxu0 %vm3559_vm9, %v3558_v8 }
 0x404   :  { %3114 = vmatprep.subr.mxu0 %v3558_v8 }
 0x406   :  { %3097 = vmatmul.mubr.msk.f32.vlgmr.msra.gmra.mrb[6].mxu0 %vm385_vm10, %v3762_v19 }
 0x407   :  { %3116 = vmatprep.mubr.msk.f32.mxu0 %vm3559_vm9, %v3558_v8 }
 0x4d5   :  { %v456_v43 = vpop.f32.mrb[4].mxu0 }
 0x4d6   :  { %v537_v44 = vmul.f32 0.25, %v456_v43  ;;  %v3093_v45 = vpop.f32.mrb[5].mxu0 }
 0x4d8   :  { %v539_v46 = vadd.f32 %v537_v44, %v3785_v23 }
 0x4d9   :  { %v533_v24 = vpop.f32.mrb[6].mxu0 }
 0x4da   :  { %v538_v48 = vmul.f32 0.25, %v533_v24  ;;  %v3098_v49 = vpop.f32.mrb[7].mxu0  ;;  %v542_v50 = vsel %vm541_vm13, %v539_v46, -inf }
 0x4db   :  { %543 = vmax.xlane.f32.xlu1 %v542_v50 }
 0x4dc   :  { %v540_v51 = vadd.f32 %v538_v48, %v3788_v47 }
 0x4de   :  { %v545_v52 = vsel %vm541_vm13, %v540_v51, -inf }
 0x4df   :  { %546 = vmax.xlane.f32.xlu0 %v545_v52  ;;  %v379_v52 = vld [vmem:[%s4174_s8 + $0x8] sm:$0xff] }
 0x4ec   :  { %640 = vrot.lane.b32.xlu1 %v3762_v19, %s3562_s28 }
 0x4f5   :  { %564 = vrot.lane.b32.xlu0 %v3758_v18, %s3562_s28 }
 0x4f9   :  { %718 = vrot.lane.b32.xlu0 %v3758_v18, %s3563_s3 }
 0x4fd   :  { %796 = vrot.lane.b32.xlu0 %v3762_v19, %s3563_s3 }
 0x568   :  { %v544_v53 = vpop.xlane.xlu1 %543 }
 0x569   :  { %v548_v54 = vsub.f32 %v539_v46, %v544_v53 }
 0x56b   :  { %v550_v55 = vmul.f32 1.442695, %v548_v54 }
 0x56c   :  { %v547_v56 = vpop.xlane.xlu0 %546  ;;  %v641_v9 = vpop.permute.xlu1 %640 }
 0x56d   :  { %3461 = vpow2.f32 %v550_v55  ;;  %v549_v57 = vsub.f32 %v540_v51, %v547_v56  ;;  %v378_v51 = vld [vmem:[%s4174_s8] sm:$0xff] }
 0x56e   :  { %v3336_v53 = vpack.c.bf16 %v379_v52, %v378_v51  ;;  %v2855_v52 = vld [vmem:[%s4177_s11] ss:$0 sm:$0xff] }
 0x56f   :  { %v552_v58 = vmul.f32 1.442695, %v549_v57 }
 0x570   :  { %v565_v59 = vpop.permute.xlu0 %564 }
 0x571   :  { %3463 = vpow2.f32 %v552_v58  ;;  %3100 = vmatpush3.msra.mxu1 %v565_v59  ;;  %v2853_v58 = vld [vmem:[%s4175_s9] ss:$0 sm:$0xff] }
 0x572   :  { %3104 = vmatprep.subr.mxu1 %v3558_v8 }
 0x574   :  { %v719_v60 = vpop.permute.xlu0 %718 }
 0x577   :  { %v3462_v61 = vpop.eup %3461 }
 0x578   :  { %v797_v62 = vpop.permute.xlu0 %796  ;;  %v554_v63 = vsel %vm541_vm13, %v3462_v61, 0.0 }
 0x579   :  { %555 = vadd.xlane.f32.xlu0 %v554_v63  ;;  %3115 = vmatpush3.xpose.msk.msra.mxu0 %vm385_vm10, %v797_v62 }
 0x57a   :  { %3124 = vmatprep.subr.mxu0 %v3558_v8 }
 0x57b   :  { %v3464_v0 = vpop.eup %3463 }
 0x57c   :  { %v557_v1 = vsel %vm541_vm13, %v3464_v0, 0.0 }
 0x57d   :  { %558 = vadd.xlane.f32.xlu0 %v557_v1 }
 0x593   :  { %716 = vrot.lane.b32.xlu0 %v3758_v18, %s3564_s30 }
 0x597   :  { %794 = vrot.lane.b32.xlu0 %v3762_v19, %s3564_s30 }
 0x606   :  { %v556_v2 = vpop.xlane.xlu0 %555 }
 0x607   :  { %3465 = vrcp.f32 %v556_v2 }
 0x60a   :  { %v559_v3 = vpop.xlane.xlu0 %558 }
 0x60b   :  { %3467 = vrcp.f32 %v559_v3 }
 0x60e   :  { %v717_v4 = vpop.permute.xlu0 %716 }
 0x611   :  { %v3466_v5 = vpop.eup %3465 }
 0x612   :  { %v795_v6 = vpop.permute.xlu0 %794  ;;  %v562_v7 = vmul.f32 %v3466_v5, %v3462_v61 }
 0x613   :  { %3117 = vmatmul.mubr.msk.f32.vlgmr.msra.gmra.mrb[8].mxu0 %vm385_vm10, %v795_v6 }
 0x614   :  { %3102 = vmatmul.mubr.msk.f32.vlgmr.msra.gmra.mrb[0].mxu1 %vm541_vm13, %v562_v7  ;;  %3126 = vmatprep.mubr.msk.f32.mxu0 %vm3559_vm9, %v3558_v8 }
 0x615   :  { %v3468_v10 = vpop.eup %3467  ;;  %3105 = vmatpush3.msra.mxu1 %v641_v9  ;;  %3106 = vmatprep.mubr.msk.f32.mxu1 %vm3559_vm9, %v3558_v8 }
 0x616   :  { %v563_v12 = vmul.f32 %v3468_v10, %v3464_v0  ;;  %3109 = vmatprep.subr.mxu1 %v3558_v8 }
 0x618   :  { %3107 = vmatmul.mubr.msk.f32.vlgmr.msra.gmra.mrb[2].mxu1 %vm541_vm13, %v563_v12 }
 0x619   :  { %3111 = vmatprep.mubr.msk.f32.mxu1 %vm3559_vm9, %v3558_v8 }
 0x61c   :  { %3110 = vmatpush3.xpose.msk.msra.mxu1 %vm385_vm10, %v719_v60 }
 0x61d   :  { %3119 = vmatprep.subr.mxu1 %v3558_v8 }
 0x61f   :  { %3112 = vmatmul.mubr.msk.f32.vlgmr.msra.gmra.mrb[4].mxu1 %vm385_vm10, %v717_v4 }
 0x620   :  { %3121 = vmatprep.mubr.msk.f32.mxu1 %vm3559_vm9, %v3558_v8 }
 0x6e6   :  { %v868_v13 = vpop.f32.mrb[8].mxu0 }
 0x6e7   :  { %v873_v15 = vmul.f32 0.25, %v868_v13  ;;  %v636_v16 = vpop.f32.mrb[0].mxu1  ;;  %v3118_v17 = vpop.f32.mrb[9].mxu0 }
 0x6e8   :  { %v3103_v20 = vpop.f32.mrb[1].mxu1 }
 0x6e9   :  { %v875_v21 = vadd.f32 %v873_v15, %v3788_v47  ;;  %v1282_v15 = vld [vmem:[%s4178_s12 + $0x8] sm:$0xff]  ;;  %v1284_v20 = vld [vmem:[%s4178_s12 + $0x18] sm:$0xff] }
 0x6eb   :  { %v712_v22 = vpop.f32.mrb[2].mxu1  ;;  %v879_v25 = vsel %vm541_vm13, %v875_v21, -inf }
 0x6ec   :  { %v3108_v26 = vpop.f32.mrb[3].mxu1  ;;  %880 = vmax.xlane.f32.xlu0 %v879_v25  ;;  %v1385_v25 = vld [vmem:[%s4180_s14 + $0x8] sm:$0xff] }
 0x6ed   :  { %v1386_v26 = vld [vmem:[%s4180_s14 + $0x10] sm:$0xff] }
 0x6f2   :  { %v790_v27 = vpop.f32.mrb[4].mxu1 }
 0x6f3   :  { %v872_v28 = vmul.f32 0.25, %v790_v27  ;;  %v3113_v29 = vpop.f32.mrb[5].mxu1 }
 0x6f5   :  { %v874_v30 = vadd.f32 %v872_v28, %v3785_v23  ;;  %v1387_v28 = vld [vmem:[%s4180_s14 + $0x18] sm:$0xff] }
 0x6f6   :  { %v3352_v29 = vpack.c.bf16 %v1387_v28, %v1386_v26  ;;  %v2859_v28 = vld [vmem:[%s4181_s15] ss:$0 sm:$0xff] }
 0x6f7   :  { %v876_v31 = vsel %vm541_vm13, %v874_v30, -inf }
 0x6f8   :  { %877 = vmax.xlane.f32.xlu1 %v876_v31  ;;  %v1389_v31 = vld [vmem:[%s4180_s14 + $0x28] sm:$0xff] }
 0x779   :  { %v881_v32 = vpop.xlane.xlu0 %880 }
 0x77a   :  { %v883_v33 = vsub.f32 %v875_v21, %v881_v32 }
 0x77c   :  { %v886_v34 = vmul.f32 1.442695, %v883_v33 }
 0x77e   :  { %3469 = vpow2.f32 %v886_v34 }
 0x785   :  { %v878_v35 = vpop.xlane.xlu1 %877 }
 0x786   :  { %v882_v36 = vsub.f32 %v874_v30, %v878_v35  ;;  %v1388_v30 = vld [vmem:[%s4180_s14 + $0x20] sm:$0xff] }
 0x787   :  { %v3356_v32 = vpack.c.bf16 %v1389_v31, %v1388_v30 }
 0x788   :  { %v3470_v37 = vpop.eup %3469  ;;  %v884_v38 = vmul.f32 1.442695, %v882_v36 }
 0x789   :  { %v891_v39 = vsel %vm541_vm13, %v3470_v37, 0.0 }
 0x78a   :  { %3471 = vpow2.f32 %v884_v38  ;;  %892 = vadd.xlane.f32.xlu1 %v891_v39 }
 0x794   :  { %v3472_v40 = vpop.eup %3471 }
 0x795   :  { %v888_v41 = vsel %vm541_vm13, %v3472_v40, 0.0 }
 0x796   :  { %889 = vadd.xlane.f32.xlu0 %v888_v41 }
 0x79b   :  { %974 = vrot.lane.b32.xlu1 %v3762_v19, %s3565_s0  ;;  %v381_v19 = vld [vmem:[%s4174_s8 + $0x18] sm:$0xff] }
 0x7ac   :  { %898 = vrot.lane.b32.xlu0 %v3758_v18, %s3565_s0  ;;  %v380_v18 = vld [vmem:[%s4174_s8 + $0x10] sm:$0xff] }
 0x7ad   :  { %v3332_v50 = vpack.c.bf16 %v381_v19, %v380_v18  ;;  %v2854_v18 = vld [vmem:[%s4176_s10] ss:$0 sm:$0xff] }
 0x817   :  { %v893_v42 = vpop.xlane.xlu1 %892 }
 0x818   :  { %3473 = vrcp.f32 %v893_v42 }
 0x81b   :  { %v975_v43 = vpop.permute.xlu1 %974 }
 0x81c   :  { %3125 = vmatpush3.msra.mxu0 %v975_v43 }
 0x822   :  { %v3474_v44 = vpop.eup %3473 }
 0x823   :  { %v897_v45 = vmul.f32 %v3474_v44, %v3470_v37  ;;  %v890_v46 = vpop.xlane.xlu0 %889 }
 0x824   :  { %3475 = vrcp.f32 %v890_v46 }
 0x825   :  { %3127 = vmatmul.mubr.msk.f32.vlgmr.msra.gmra.mrb[10].mxu0 %vm541_vm13, %v897_v45 }
 0x827   :  { %v899_v24 = vpop.permute.xlu0 %898 }
 0x828   :  { %3120 = vmatpush3.msra.mxu1 %v899_v24 }
 0x829   :  { %3333 = vmatprep.subr.bf16.mxu1 %v3332_v50 }
 0x82e   :  { %v3476_v48 = vpop.eup %3475 }
 0x82f   :  { %v896_v49 = vmul.f32 %v3476_v48, %v3472_v40 }
 0x831   :  { %3122 = vmatmul.mubr.msk.f32.vlgmr.msra.gmra.mrb[6].mxu1 %vm541_vm13, %v896_v49 }
 0x832   :  { %3335 = vmatpush3.bf16.msra.mxu1 %v3332_v50 }
 0x833   :  { %3337 = vmatprep.subr.bf16.mxu1 %v3336_v53 }
 0x8f8   :  { %v1046_v54 = vpop.f32.mrb[10].mxu0 }
 0x8f9   :  { %v3128_v55 = vpop.f32.mrb[11].mxu0 }
 0x904   :  { %v970_v56 = vpop.f32.mrb[6].mxu1 }
 0x905   :  { %v3123_v57 = vpop.f32.mrb[7].mxu1  ;;  %3133 = vmatprep.mubr.msk.f32.mxu1 %vm385_vm10, %v970_v56 }
 0x906   :  { %3134 = vmatmul.mubr.msk.f32.vlgmr.msra.gmra.mrb[8].mxu1 %vm385_vm10, %v1046_v54  ;;  %v1390_v57 = vld [vmem:[%s4180_s14 + $0x30] sm:$0xff] }
 0x907   :  { %3339 = vmatpush3.bf16.msra.mxu1 %v3336_v53  ;;  %3140 = vmatprep.mubr.msk.f32.mxu1 %vm385_vm10, %v636_v16  ;;  %v1283_v16 = vld [vmem:[%s4178_s12 + $0x10] sm:$0xff] }
 0x908   :  { %v3344_v21 = vpack.c.bf16 %v1284_v20, %v1283_v16 }
 0x90e   :  { %3141 = vmatmul.mubr.msk.f32.vlgmr.msra.gmra.mrb[8].mxu1 %vm385_vm10, %v712_v22  ;;  %v1384_v22 = vld [vmem:[%s4180_s14] sm:$0xff] }
 0x90f   :  { %v3348_v27 = vpack.c.bf16 %v1385_v25, %v1384_v22 }
 0x911   :  { %3349 = vmatprep.subr.bf16.mxu1 %v3348_v27 }
 0x912   :  { %3351 = vmatpush3.bf16.msra.mxu1 %v3348_v27 }
 0x913   :  { %3353 = vmatprep.subr.bf16.mxu1 %v3352_v29 }
 0x916   :  { %3355 = vmatpush3.bf16.msra.mxu1 %v3352_v29 }
 0x917   :  { %3357 = vmatprep.subr.bf16.mxu1 %v3356_v32 }
 0x91a   :  { %3359 = vmatpush3.bf16.msra.mxu1 %v3356_v32 }
 0x9e1   :  { %v3142_v59 = vpop.f32.mrb[8].mxu1 }
 0x9e2   :  { %v1220_v60 = vadd.f32 %v3142_v59, %v2853_v58  ;;  %v1203_v61 = vpop.f32.mrb[9].mxu1 }
 0x9e3   :  { %v1219_v62 = vadd.f32 %v2853_v58, %v1203_v61  ;;  %v1391_v58 = vld [vmem:[%s4180_s14 + $0x38] sm:$0xff]  ;;  %v1393_v61 = vld [vmem:[%s4180_s14 + $0x48] sm:$0xff] }
 0x9e4   :  { %v1222_v63 = vadd.f32 %v1220_v60, %v3747_v14  ;;  %v3360_v59 = vpack.c.bf16 %v1391_v58, %v1390_v57  ;;  %v1392_v60 = vld [vmem:[%s4180_s14 + $0x40] sm:$0xff] }
 0x9e5   :  { %v1221_v0 = vadd.f32 %v1219_v62, %v3743_v11  ;;  %v1281_v11 = vld [vmem:[%s4178_s12] sm:$0xff]  ;;  %v3364_v62 = vpack.c.bf16 %v1393_v61, %v1392_v60 }
 0x9e6   :  { %v1228_v1 = vsel %vm228_vm4, %v1222_v63, 0.0  ;;  %v3340_v17 = vpack.c.bf16 %v1282_v15, %v1281_v11  ;;  %3361 = vmatprep.subr.bf16.mxu1 %v3360_v59 }
 0x9e7   :  { %1229 = vadd.xlane.f32.xlu0 %v1228_v1  ;;  %v1225_v2 = vsel %vm228_vm4, %v1221_v0, 0.0  ;;  %3363 = vmatpush3.bf16.msra.mxu1 %v3360_v59 }
 0x9e8   :  { %1226 = vadd.xlane.f32.xlu1 %v1225_v2  ;;  %3341 = vmatprep.subr.bf16.mxu0 %v3340_v17  ;;  %v1396_v2 = vld [vmem:[%s4180_s14 + $0x60] sm:$0xff] }
 0x9e9   :  { %3343 = vmatpush3.bf16.msra.mxu0 %v3340_v17  ;;  %3365 = vmatprep.subr.bf16.mxu1 %v3364_v62 }
 0x9ea   :  { %3345 = vmatprep.subr.bf16.mxu0 %v3344_v21 }
 0x9eb   :  { %3367 = vmatpush3.bf16.msra.mxu1 %v3364_v62 }
 0x9ed   :  { %3347 = vmatpush3.bf16.msra.mxu0 %v3344_v21 }
 0xa74   :  { %v1230_v3 = vpop.xlane.xlu0 %1229 }
 0xa75   :  { %v1232_v4 = vmul.f32 0.03125, %v1230_v3  ;;  %v1227_v5 = vpop.xlane.xlu1 %1226  ;;  %v1397_v3 = vld [vmem:[%s4180_s14 + $0x68] sm:$0xff] }
 0xa76   :  { %v1231_v6 = vmul.f32 0.03125, %v1227_v5  ;;  %v1398_v5 = vld [vmem:[%s4180_s14 + $0x70] sm:$0xff] }
 0xa77   :  { %v1234_v7 = vsub.f32 %v1222_v63, %v1232_v4  ;;  %v1394_v63 = vld [vmem:[%s4180_s14 + $0x50] sm:$0xff]  ;;  %v3372_v4 = vpack.c.bf16 %v1397_v3, %v1396_v2 }
 0xa78   :  { %v1233_v9 = vsub.f32 %v1221_v0, %v1231_v6  ;;  %v1395_v0 = vld [vmem:[%s4180_s14 + $0x58] sm:$0xff] }
 0xa79   :  { %v1236_v10 = vmul.f32 %v1234_v7, %v1234_v7  ;;  %v3368_v1 = vpack.c.bf16 %v1395_v0, %v1394_v63  ;;  %v1399_v6 = vld [vmem:[%s4180_s14 + $0x78] sm:$0xff] }
 0xa7a   :  { %v1235_v12 = vmul.f32 %v1233_v9, %v1233_v9 }
 0xa7b   :  { %v1240_v13 = vsel %vm228_vm4, %v1236_v10, 0.0  ;;  %3369 = vmatprep.subr.bf16.mxu1 %v3368_v1 }
 0xa7c   :  { %1241 = vadd.xlane.f32.xlu1 %v1240_v13  ;;  %v1237_v14 = vsel %vm228_vm4, %v1235_v12, 0.0  ;;  %3371 = vmatpush3.bf16.msra.mxu1 %v3368_v1 }
 0xa7d   :  { %1238 = vadd.xlane.f32.xlu0 %v1237_v14  ;;  %3373 = vmatprep.subr.bf16.mxu1 %v3372_v4 }
 0xa80   :  { %3375 = vmatpush3.bf16.msra.mxu1 %v3372_v4  ;;  %v2860_v4 = vld [vmem:[%s4182_s16] ss:$0 sm:$0xff] }
 0xb09   :  { %v1242_v33 = vpop.xlane.xlu1 %1241 }
 0xb0a   :  { %v1244_v34 = vmul.f32 0.03125, %v1242_v33  ;;  %v1239_v35 = vpop.xlane.xlu0 %1238 }
 0xb0b   :  { %v1243_v36 = vmul.f32 0.03125, %v1239_v35 }
 0xb0c   :  { %v1246_v37 = vadd.f32 1e-12, %v1244_v34 }
 0xb0d   :  { %v1245_v38 = vadd.f32 1e-12, %v1243_v36 }
 0xb0e   :  { %3477 = vrsqrt.f32 %v1246_v37  ;;  %vm1256_vm14 = vcmp.eq.f32.partialorder %v1246_v37, inf  ;;  %v1259_v42 = vand.u32 2147483648, %v1246_v37  ;;  %vm1258_vm15 = vcmp.eq.f32.partialorder %v1246_v37, 0.0 }
 0xb0f   :  { %3479 = vrsqrt.f32 %v1245_v38  ;;  %vm1249_vm0 = vcmp.eq.f32.partialorder %v1245_v38, inf  ;;  %v1252_v45 = vand.u32 2147483648, %v1245_v38  ;;  %vm1251_vm1 = vcmp.eq.f32.partialorder %v1245_v38, 0.0 }
 0xb18   :  { %v3478_v39 = vpop.eup %3477 }
 0xb19   :  { %v3480_v40 = vpop.eup %3479  ;;  %v1255_v41 = vmul.f32 %v3478_v39, %v1246_v37 }
 0xb1a   :  { %v1248_v43 = vmul.f32 %v3480_v40, %v1245_v38 }
 0xb1b   :  { %v1257_v44 = vsel %vm1256_vm14, %v1246_v37, %v1255_v41 }
 0xb1c   :  { %v1260_v46 = vsel %vm1258_vm15, %v1259_v42, %v1257_v44  ;;  %v1250_v24 = vsel %vm1249_vm0, %v1245_v38, %v1248_v43 }
 0xb1d   :  { %3481 = vrcp.f32 %v1260_v46  ;;  %v1253_v48 = vsel %vm1251_vm1, %v1252_v45, %v1250_v24  ;;  %v2862_v24 = vld [vmem:[%s4172_s6 + $0x20] sm:$0xff] }
 0xb1e   :  { %3483 = vrcp.f32 %v1253_v48  ;;  %v2863_v48 = vld [vmem:[%s4172_s6 + $0x28] sm:$0xff] }
 0xb27   :  { %v3482_v49 = vpop.eup %3481 }
 0xb28   :  { %v3484_v19 = vpop.eup %3483  ;;  %v1264_v50 = vmul.f32 %v3482_v49, %v1234_v7  ;;  %v3376_v7 = vpack.c.bf16 %v1399_v6, %v1398_v5  ;;  %v2864_v49 = vld [vmem:[%s4172_s6 + $0x30] sm:$0xff] }
 0xb29   :  { %v1262_v51 = vmul.f32 %v3484_v19, %v1233_v9  ;;  %v2856_v9 = vld [vmem:[%s4195_s19] ss:$0 sm:$0xff]  ;;  %v2865_v19 = vld [vmem:[%s4172_s6 + $0x38] sm:$0xff] }
 0xb2a   :  { %v1272_v53 = vmul.f32 %v2854_v18, %v1264_v50  ;;  %3377 = vmatprep.subr.bf16.mxu1 %v3376_v7  ;;  %v3384_v50 = vpack.c.bf16 %v2865_v19, %v2864_v49 }
 0xb2b   :  { %v1271_v54 = vmul.f32 %v2854_v18, %v1262_v51  ;;  %3379 = vmatpush3.bf16.msra.mxu1 %v3376_v7  ;;  %v3380_v18 = vpack.c.bf16 %v2863_v48, %v2862_v24 }
 0xb2c   :  { %v1280_v56 = vadd.f32 %v2855_v52, %v1272_v53  ;;  %3230 = vmatprep.subr.mxu1 %v3558_v8 }
 0xb2d   :  { %v1279_v55 = vadd.f32 %v2855_v52, %v1271_v54  ;;  %3381 = vmatprep.subr.bf16.mxu0 %v3380_v18 }
 0xb2f   :  { %3151 = vmatprep.mubr.msk.f32.mxu0 %vm228_vm4, %v1279_v55 }
 0xb30   :  { %3152 = vmatmul.mubr.msk.f32.vlgmr.msra.gmra.mrb[12].mxu0 %vm228_vm4, %v1280_v56 }
 0xb31   :  { %3383 = vmatpush3.bf16.msra.mxu0 %v3380_v18 }
 0xb32   :  { %3385 = vmatprep.subr.bf16.mxu0 %v3384_v50 }
 0xb35   :  { %3387 = vmatpush3.bf16.msra.mxu0 %v3384_v50 }
 0xb36   :  { %3200 = vmatprep.subr.mxu0 %v3558_v8 }
 0xc03   :  { %v3153_v10 = vpop.f32.mrb[12].mxu0 }
 0xc04   :  { %v1370_v12 = vadd.f32 %v3153_v10, %v2856_v9  ;;  %v1364_v13 = vpop.f32.mrb[13].mxu0 }
 0xc05   :  { %v1365_v14 = vadd.f32 %v2856_v9, %v1364_v13  ;;  %v2861_v9 = vld [vmem:[%s4183_s17] ss:$0 sm:$0xff] }
 0xc06   :  { %v1377_v11 = vmul.f32 0.70710677, %v1370_v12  ;;  %v1374_v25 = vmul.f32 0.5, %v1370_v12 }
 0xc07   :  { %v1376_v15 = vmul.f32 0.70710677, %v1365_v14  ;;  %v1373_v21 = vmul.f32 0.5, %v1365_v14 }
 0xc08   :  { %3485 = verf.f32 %v1377_v11  ;;  %v2867_v11 = vld [vmem:[%s4173_s7 + $0x1] ss:$0 sm:$0xff] }
 0xc09   :  { %3487 = verf.f32 %v1376_v15 }
 0xc12   :  { %v3486_v16 = vpop.eup %3485 }
 0xc13   :  { %v3488_v17 = vpop.eup %3487  ;;  %v1381_v20 = vadd.f32 1.0, %v3486_v16 }
 0xc14   :  { %v1380_v22 = vadd.f32 1.0, %v3488_v17 }
 0xc15   :  { %v1383_v27 = vmul.f32 %v1381_v20, %v1374_v25 }
 0xc16   :  { %v1382_v26 = vmul.f32 %v1380_v22, %v1373_v21 }
 0xc18   :  { %3186 = vmatprep.mubr.f32.mxu1 %v1382_v26 }
 0xc19   :  { %3187 = vmatmul.mubr.f32.vlgmr.msra.gmra.mrb[10].mxu1 %v1383_v27 }
 0xc1a   :  { %3232 = vmatprep.mubr.msk.f32.mxu1 %vm3559_vm9, %v3558_v8 }
 0xcec   :  { %v3188_v29 = vpop.f32.mrb[10].mxu1 }
 0xced   :  { %v1479_v30 = vadd.f32 %v3188_v29, %v2859_v28  ;;  %v1473_v31 = vpop.f32.mrb[11].mxu1 }
 0xcee   :  { %v1474_v32 = vadd.f32 %v2859_v28, %v1473_v31 }
 0xcef   :  { %v1483_v33 = vadd.f32 %v1479_v30, %v1280_v56 }
 0xcf0   :  { %v1482_v34 = vadd.f32 %v1474_v32, %v1279_v55 }
 0xcf1   :  { %v1489_v35 = vsel %vm228_vm4, %v1483_v33, 0.0 }
 0xcf2   :  { %1490 = vadd.xlane.f32.xlu1 %v1489_v35  ;;  %v1486_v36 = vsel %vm228_vm4, %v1482_v34, 0.0 }
 0xcf3   :  { %1487 = vadd.xlane.f32.xlu0 %v1486_v36 }
 0xd7f   :  { %v1491_v37 = vpop.xlane.xlu1 %1490 }
 0xd80   :  { %v1493_v38 = vmul.f32 0.03125, %v1491_v37  ;;  %v1488_v39 = vpop.xlane.xlu0 %1487 }
 0xd81   :  { %v1492_v40 = vmul.f32 0.03125, %v1488_v39 }
 0xd82   :  { %v1495_v41 = vsub.f32 %v1483_v33, %v1493_v38 }
 0xd83   :  { %v1494_v42 = vsub.f32 %v1482_v34, %v1492_v40 }
 0xd84   :  { %v1497_v43 = vmul.f32 %v1495_v41, %v1495_v41 }
 0xd85   :  { %v1496_v44 = vmul.f32 %v1494_v42, %v1494_v42 }
 0xd86   :  { %v1501_v45 = vsel %vm228_vm4, %v1497_v43, 0.0 }
 0xd87   :  { %1502 = vadd.xlane.f32.xlu1 %v1501_v45  ;;  %v1498_v46 = vsel %vm228_vm4, %v1496_v44, 0.0 }
 0xd88   :  { %1499 = vadd.xlane.f32.xlu0 %v1498_v46 }
 0xe14   :  { %v1503_v51 = vpop.xlane.xlu1 %1502 }
 0xe15   :  { %v1505_v52 = vmul.f32 0.03125, %v1503_v51  ;;  %v1500_v53 = vpop.xlane.xlu0 %1499 }
 0xe16   :  { %v1504_v54 = vmul.f32 0.03125, %v1500_v53 }
 0xe17   :  { %v1507_v55 = vadd.f32 1e-12, %v1505_v52 }
 0xe18   :  { %v1506_v56 = vadd.f32 1e-12, %v1504_v54 }
 0xe19   :  { %3489 = vrsqrt.f32 %v1507_v55  ;;  %vm1517_vm2 = vcmp.eq.f32.partialorder %v1507_v55, inf  ;;  %v1520_v60 = vand.u32 2147483648, %v1507_v55  ;;  %vm1519_vm3 = vcmp.eq.f32.partialorder %v1507_v55, 0.0 }
 0xe1a   :  { %3491 = vrsqrt.f32 %v1506_v56  ;;  %vm1510_vm5 = vcmp.eq.f32.partialorder %v1506_v56, inf  ;;  %v1513_v63 = vand.u32 2147483648, %v1506_v56  ;;  %vm1512_vm6 = vcmp.eq.f32.partialorder %v1506_v56, 0.0 }
 0xe23   :  { %v3490_v57 = vpop.eup %3489 }
 0xe24   :  { %v3492_v58 = vpop.eup %3491  ;;  %v1516_v59 = vmul.f32 %v3490_v57, %v1507_v55 }
 0xe25   :  { %v1509_v61 = vmul.f32 %v3492_v58, %v1506_v56 }
 0xe26   :  { %v1518_v62 = vsel %vm1517_vm2, %v1507_v55, %v1516_v59 }
 0xe27   :  { %v1521_v0 = vsel %vm1519_vm3, %v1520_v60, %v1518_v62  ;;  %v1511_v1 = vsel %vm1510_vm5, %v1506_v56, %v1509_v61 }
 0xe28   :  { %3493 = vrcp.f32 %v1521_v0  ;;  %v1514_v2 = vsel %vm1512_vm6, %v1513_v63, %v1511_v1 }
 0xe29   :  { %3495 = vrcp.f32 %v1514_v2 }
 0xe32   :  { %v3494_v3 = vpop.eup %3493 }
 0xe33   :  { %v3496_v5 = vpop.eup %3495  ;;  %v1525_v6 = vmul.f32 %v3494_v3, %v1495_v41 }
 0xe34   :  { %v1523_v7 = vmul.f32 %v3496_v5, %v1494_v42 }
 0xe35   :  { %v1533_v10 = vmul.f32 %v2860_v4, %v1525_v6 }
 0xe36   :  { %v1532_v12 = vmul.f32 %v2860_v4, %v1523_v7 }
 0xe37   :  { %v3964_v14 = vadd.f32 %v2861_v9, %v1533_v10 }
 0xe38   :  { %v3962_v13 = vadd.f32 %v2861_v9, %v1532_v12 }
 0xe3a   :  { %3197 = vmatprep.mubr.msk.f32.mxu0 %vm228_vm4, %v3962_v13 }
 0xe3b   :  { %3198 = vmatmul.mubr.msk.f32.vlgmr.msra.gmra.mrb[14].mxu0 %vm228_vm4, %v3964_v14 }
 0xe3c   :  { %3202 = vmatprep.mubr.msk.f32.mxu0 %vm3559_vm9, %v3558_v8 }
 0xf0e   :  { %v3199_v15 = vpop.f32.mrb[14].mxu0 }
 0xf0f   :  { %v3975_v16 = vadd.f32 %v3199_v15, %v2867_v11  ;;  %v1627_v17 = vpop.f32.mrb[15].mxu0 }
 0xf10   :  { %v3977_v20 = vadd.f32 %v2867_v11, %v1627_v17 }
 0xf11   :  { %1719 = vrot.lane.b32.xlu1 %v3975_v16, %s3560_s25 }
 0xf12   :  { %1642 = vrot.lane.b32.xlu0 %v3977_v20, %s3560_s25 }
 0xf83   :  { %v1720_v22 = vpop.permute.xlu1 %1719 }
 0xf84   :  { %v1643_v21 = vpop.permute.xlu0 %1642 }
 0xf85   :  { %3201 = vmatpush3.xpose.msk.msra.mxu0 %vm385_vm10, %v1643_v21 }
 0xf86   :  { %3205 = vmatprep.subr.mxu0 %v3558_v8 }
 0xf88   :  { %3203 = vmatmul.mubr.msk.f32.vlgmr.msra.gmra.mrb[16].mxu0 %vm385_vm10, %v3977_v20 }
 0xf89   :  { %3206 = vmatpush3.xpose.msk.msra.mxu0 %vm385_vm10, %v1720_v22  ;;  %3207 = vmatprep.mubr.msk.f32.mxu0 %vm3559_vm9, %v3558_v8 }
 0xf8a   :  { %3210 = vmatprep.subr.mxu0 %v3558_v8 }
 0xf8c   :  { %3208 = vmatmul.mubr.msk.f32.vlgmr.msra.gmra.mrb[18].mxu0 %vm385_vm10, %v3975_v16 }
 0xf8d   :  { %3212 = vmatprep.mubr.msk.f32.mxu0 %vm3559_vm9, %v3558_v8 }
0x105b   :  { %v1714_v25 = vpop.f32.mrb[16].mxu0 }
0x105c   :  { %v1795_v26 = vmul.f32 0.25, %v1714_v25  ;;  %v3204_v27 = vpop.f32.mrb[17].mxu0 }
0x105e   :  { %v1797_v28 = vadd.f32 %v1795_v26, %v3785_v23 }
0x105f   :  { %v1791_v29 = vpop.f32.mrb[18].mxu0 }
0x1060   :  { %v1796_v30 = vmul.f32 0.25, %v1791_v29  ;;  %v3209_v31 = vpop.f32.mrb[19].mxu0  ;;  %v1799_v32 = vsel %vm541_vm13, %v1797_v28, -inf }
0x1061   :  { %1800 = vmax.xlane.f32.xlu1 %v1799_v32  ;;  %v2871_v31 = vld [vmem:[%s4174_s8 + $0x28] sm:$0xff] }
0x1062   :  { %v1798_v33 = vadd.f32 %v1796_v30, %v3788_v47  ;;  %v2870_v30 = vld [vmem:[%s4174_s8 + $0x20] sm:$0xff] }
0x1063   :  { %v3392_v32 = vpack.c.bf16 %v2871_v31, %v2870_v30 }
0x1064   :  { %v1802_v34 = vsel %vm541_vm13, %v1798_v33, -inf }
0x1065   :  { %1803 = vmax.xlane.f32.xlu0 %v1802_v34 }
0x1072   :  { %1897 = vrot.lane.b32.xlu1 %v3975_v16, %s3562_s28 }
0x1076   :  { %1975 = vrot.lane.b32.xlu1 %v3977_v20, %s3563_s3 }
0x10ee   :  { %v1801_v35 = vpop.xlane.xlu1 %1800 }
0x10ef   :  { %v1805_v36 = vsub.f32 %v1797_v28, %v1801_v35 }
0x10f1   :  { %v1807_v37 = vmul.f32 1.442695, %v1805_v36 }
0x10f2   :  { %v1804_v38 = vpop.xlane.xlu0 %1803  ;;  %v1898_v45 = vpop.permute.xlu1 %1897 }
0x10f3   :  { %3497 = vpow2.f32 %v1807_v37  ;;  %v1806_v39 = vsub.f32 %v1798_v33, %v1804_v38  ;;  %v2891_v37 = vld [vmem:[%s4175_s9 + $0x1] ss:$0 sm:$0xff]  ;;  %s3566_s9 = smov [#allocation2]  }
0x10f4   :  { %s2814_s23 = sshll.u32 %s3566_s9, 4  ;;  %s2815_s23 = int_to_ptr.vmem [resolvable:$true] %s2814_s23 }
0x10f5   :  { %v1809_v40 = vmul.f32 1.442695, %v1806_v39  ;;  %p3538_p1 = scmp.lt.s32.totalorder %s2815_s23, %s2815_s23 }
0x10f6   :  { %v1976_v46 = vpop.permute.xlu1 %1975 }
0x10f7   :  { %3499 = vpow2.f32 %v1809_v40 }
0x10fd   :  { %v3498_v41 = vpop.eup %3497 }
0x10fe   :  { %v1811_v42 = vsel %vm541_vm13, %v3498_v41, 0.0 }
0x10ff   :  { %1812 = vadd.xlane.f32.xlu0 %v1811_v42 }
0x1101   :  { %v3500_v43 = vpop.eup %3499 }
0x1102   :  { %v1814_v44 = vsel %vm541_vm13, %v3500_v43, 0.0 }
0x1103   :  { %1815 = vadd.xlane.f32.xlu1 %v1814_v44 }
0x1114   :  { %2053 = vrot.lane.b32.xlu1 %v3975_v16, %s3563_s3 }
0x1115   :  { %1821 = vrot.lane.b32.xlu0 %v3977_v20, %s3562_s28 }
0x1119   :  { %1973 = vrot.lane.b32.xlu0 %v3977_v20, %s3564_s30 }
0x111d   :  { %2051 = vrot.lane.b32.xlu0 %v3975_v16, %s3564_s30 }
0x118c   :  { %v1813_v24 = vpop.xlane.xlu0 %1812 }
0x118d   :  { %3501 = vrcp.f32 %v1813_v24 }
0x1190   :  { %v1816_v48 = vpop.xlane.xlu1 %1815  ;;  %v1822_v49 = vpop.permute.xlu0 %1821 }
0x1191   :  { %3503 = vrcp.f32 %v1816_v48  ;;  %3211 = vmatpush3.msra.mxu0 %v1822_v49 }
0x1192   :  { %3215 = vmatprep.subr.mxu0 %v3558_v8 }
0x1194   :  { %v1974_v52 = vpop.permute.xlu0 %1973  ;;  %v2054_v53 = vpop.permute.xlu1 %2053 }
0x1197   :  { %v3502_v18 = vpop.eup %3501 }
0x1198   :  { %v1819_v19 = vmul.f32 %v3502_v18, %v3498_v41  ;;  %v2052_v54 = vpop.permute.xlu0 %2051 }
0x119a   :  { %3213 = vmatmul.mubr.msk.f32.vlgmr.msra.gmra.mrb[20].mxu0 %vm541_vm13, %v1819_v19 }
0x119b   :  { %v3504_v50 = vpop.eup %3503  ;;  %3216 = vmatpush3.msra.mxu0 %v1898_v45  ;;  %3217 = vmatprep.mubr.msk.f32.mxu0 %vm3559_vm9, %v3558_v8 }
0x119c   :  { %v1820_v51 = vmul.f32 %v3504_v50, %v3500_v43  ;;  %3220 = vmatprep.subr.mxu0 %v3558_v8 }
0x119e   :  { %3218 = vmatmul.mubr.msk.f32.vlgmr.msra.gmra.mrb[22].mxu0 %vm541_vm13, %v1820_v51 }
0x119f   :  { %3222 = vmatprep.mubr.msk.f32.mxu0 %vm3559_vm9, %v3558_v8 }
0x11a2   :  { %3221 = vmatpush3.xpose.msk.msra.mxu0 %vm385_vm10, %v1976_v46 }
0x11a3   :  { %3225 = vmatprep.subr.mxu0 %v3558_v8 }
0x11a5   :  { %3223 = vmatmul.mubr.msk.f32.vlgmr.msra.gmra.mrb[24].mxu0 %vm385_vm10, %v1974_v52 }
0x11a6   :  { %3226 = vmatpush3.xpose.msk.msra.mxu0 %vm385_vm10, %v2054_v53  ;;  %3227 = vmatprep.mubr.msk.f32.mxu0 %vm3559_vm9, %v3558_v8  ;;  %v2897_v53 = vld [vmem:[%s4178_s12 + $0x28] sm:$0xff] }
0x11a7   :  { %3235 = vmatprep.subr.mxu0 %v3558_v8 }
0x11a9   :  { %3228 = vmatmul.mubr.msk.f32.vlgmr.msra.gmra.mrb[26].mxu0 %vm385_vm10, %v2052_v54  ;;  %v2898_v54 = vld [vmem:[%s4178_s12 + $0x30] sm:$0xff] }
0x11aa   :  { %3237 = vmatprep.mubr.msk.f32.mxu0 %vm3559_vm9, %v3558_v8 }
0x126d   :  { %v1893_v55 = vpop.f32.mrb[20].mxu0 }
0x126e   :  { %v3214_v56 = vpop.f32.mrb[21].mxu0 }
0x126f   :  { %v2899_v56 = vld [vmem:[%s4178_s12 + $0x38] sm:$0xff] }
0x1271   :  { %v1969_v57 = vpop.f32.mrb[22].mxu0 }
0x1272   :  { %v3219_v58 = vpop.f32.mrb[23].mxu0 }
0x1273   :  { %v2904_v58 = vld [vmem:[%s4180_s14 + $0x80] sm:$0xff] }
0x1278   :  { %v2047_v59 = vpop.f32.mrb[24].mxu0 }
0x1279   :  { %v2129_v60 = vmul.f32 0.25, %v2047_v59  ;;  %v3224_v61 = vpop.f32.mrb[25].mxu0  ;;  %v2905_v59 = vld [vmem:[%s4180_s14 + $0x88] sm:$0xff] }
0x127a   :  { %v3404_v61 = vpack.c.bf16 %v2905_v59, %v2904_v58  ;;  %v2921_v59 = vld [vmem:[%s4181_s15 + $0x1] ss:$0 sm:$0xff] }
0x127b   :  { %v2131_v62 = vadd.f32 %v2129_v60, %v3785_v23  ;;  %v2906_v60 = vld [vmem:[%s4180_s14 + $0x90] sm:$0xff] }
0x127c   :  { %v2125_v63 = vpop.f32.mrb[26].mxu0 }
0x127d   :  { %v2130_v0 = vmul.f32 0.25, %v2125_v63  ;;  %v3229_v1 = vpop.f32.mrb[27].mxu0  ;;  %v2133_v2 = vsel %vm541_vm13, %v2131_v62, -inf }
0x127e   :  { %2134 = vmax.xlane.f32.xlu1 %v2133_v2  ;;  %v2909_v1 = vld [vmem:[%s4180_s14 + $0xa8] sm:$0xff] }
0x127f   :  { %v2132_v3 = vadd.f32 %v2130_v0, %v3788_v47  ;;  %v2908_v0 = vld [vmem:[%s4180_s14 + $0xa0] sm:$0xff] }
0x1280   :  { %v3412_v2 = vpack.c.bf16 %v2909_v1, %v2908_v0 }
0x1281   :  { %v2136_v4 = vsel %vm541_vm13, %v2132_v3, -inf }
0x1282   :  { %2137 = vmax.xlane.f32.xlu0 %v2136_v4 }
0x130b   :  { %v2135_v8 = vpop.xlane.xlu1 %2134 }
0x130c   :  { %v2139_v5 = vsub.f32 %v2131_v62, %v2135_v8  ;;  %v2907_v62 = vld [vmem:[%s4180_s14 + $0x98] sm:$0xff] }
0x130d   :  { %v3408_v63 = vpack.c.bf16 %v2907_v62, %v2906_v60 }
0x130e   :  { %v2141_v6 = vmul.f32 1.442695, %v2139_v5 }
0x130f   :  { %v2138_v7 = vpop.xlane.xlu0 %2137 }
0x1310   :  { %3505 = vpow2.f32 %v2141_v6  ;;  %v2140_v9 = vsub.f32 %v2132_v3, %v2138_v7 }
0x1312   :  { %v2143_v10 = vmul.f32 1.442695, %v2140_v9 }
0x1314   :  { %3507 = vpow2.f32 %v2143_v10 }
0x131a   :  { %v3506_v23 = vpop.eup %3505 }
0x131b   :  { %v2145_v12 = vsel %vm541_vm13, %v3506_v23, 0.0 }
0x131c   :  { %2146 = vadd.xlane.f32.xlu0 %v2145_v12 }
0x131e   :  { %v3508_v11 = vpop.eup %3507 }
0x131f   :  { %v2148_v15 = vsel %vm541_vm13, %v3508_v11, 0.0 }
0x1320   :  { %2149 = vadd.xlane.f32.xlu1 %v2148_v15 }
0x1331   :  { %2231 = vrot.lane.b32.xlu1 %v3975_v16, %s3565_s0  ;;  %v2872_v16 = vld [vmem:[%s4174_s8 + $0x30] sm:$0xff] }
0x1332   :  { %2155 = vrot.lane.b32.xlu0 %v3977_v20, %s3565_s0  ;;  %v2873_v20 = vld [vmem:[%s4174_s8 + $0x38] sm:$0xff] }
0x1333   :  { %v3388_v29 = vpack.c.bf16 %v2873_v20, %v2872_v16  ;;  %v2895_v20 = vld [vmem:[%s4177_s11 + $0x1] ss:$0 sm:$0xff] }
0x13a9   :  { %v2147_v47 = vpop.xlane.xlu0 %2146 }
0x13aa   :  { %3509 = vrcp.f32 %v2147_v47 }
0x13ad   :  { %v2150_v17 = vpop.xlane.xlu1 %2149  ;;  %v2156_v21 = vpop.permute.xlu0 %2155 }
0x13ae   :  { %3511 = vrcp.f32 %v2150_v17  ;;  %3231 = vmatpush3.msra.mxu1 %v2156_v21 }
0x13af   :  { %3389 = vmatprep.subr.bf16.mxu1 %v3388_v29 }
0x13b1   :  { %v2232_v22 = vpop.permute.xlu1 %2231 }
0x13b2   :  { %3236 = vmatpush3.msra.mxu0 %v2232_v22 }
0x13b4   :  { %v3510_v25 = vpop.eup %3509 }
0x13b5   :  { %v2153_v26 = vmul.f32 %v3510_v25, %v3506_v23 }
0x13b7   :  { %3233 = vmatmul.mubr.msk.f32.vlgmr.msra.gmra.mrb[12].mxu1 %vm541_vm13, %v2153_v26  ;;  %v2894_v26 = vld [vmem:[%s4176_s10 + $0x1] ss:$0 sm:$0xff]  ;;  %s3533_s10 = scalar_lea.vmem %s2815_s23, 256 }
0x13b8   :  { %v3512_v27 = vpop.eup %3511  ;;  %3391 = vmatpush3.bf16.msra.mxu1 %v3388_v29  ;;  %p3534_p0 = scmp.ne.s32.totalorder %s2815_s23, %s3533_s10  ;;  %p3539_p2 = scmp.lt.s32.totalorder %s3533_s10, %s3533_s10 }
0x13b9   :  { %v2154_v28 = vmul.f32 %v3512_v27, %v3508_v11  ;;  %3393 = vmatprep.subr.bf16.mxu1 %v3392_v32 }
0x13ba   :  { %p3540_p3 = por %p3539_p2, %p3538_p1 }
0x13bb   :  { %3238 = vmatmul.mubr.msk.f32.vlgmr.msra.gmra.mrb[28].mxu0 %vm541_vm13, %v2154_v28 }
0x13bc   :  { %p3541_p4 = pnand %p3540_p3, %p3534_p0 }
0x148a   :  { %v2227_v33 = vpop.f32.mrb[12].mxu1 }
0x148b   :  { %v3234_v34 = vpop.f32.mrb[13].mxu1  ;;  %3244 = vmatprep.mubr.msk.f32.mxu1 %vm385_vm10, %v2227_v33  ;;  %v2910_v33 = vld [vmem:[%s4180_s14 + $0xb0] sm:$0xff] }
0x148c   :  { %v2911_v34 = vld [vmem:[%s4180_s14 + $0xb8] sm:$0xff] }
0x148e   :  { %v2303_v35 = vpop.f32.mrb[28].mxu0 }
0x148f   :  { %v3239_v36 = vpop.f32.mrb[29].mxu0  ;;  %3245 = vmatmul.mubr.msk.f32.vlgmr.msra.gmra.mrb[14].mxu1 %vm385_vm10, %v2303_v35  ;;  %v3416_v35 = vpack.c.bf16 %v2911_v34, %v2910_v33 }
0x1490   :  { %3395 = vmatpush3.bf16.msra.mxu1 %v3392_v32  ;;  %3251 = vmatprep.mubr.msk.f32.mxu1 %vm385_vm10, %v1893_v55  ;;  %v2912_v36 = vld [vmem:[%s4180_s14 + $0xc0] sm:$0xff] }
0x1491   :  { %3405 = vmatprep.subr.bf16.mxu1 %v3404_v61 }
0x1497   :  { %3252 = vmatmul.mubr.msk.f32.vlgmr.msra.gmra.mrb[14].mxu1 %vm385_vm10, %v1969_v57  ;;  %v3400_v57 = vpack.c.bf16 %v2899_v56, %v2898_v54 }
0x1498   :  { %3407 = vmatpush3.bf16.msra.mxu1 %v3404_v61 }
0x1499   :  { %3409 = vmatprep.subr.bf16.mxu1 %v3408_v63 }
0x149c   :  { %3411 = vmatpush3.bf16.msra.mxu1 %v3408_v63 }
0x149d   :  { %3413 = vmatprep.subr.bf16.mxu1 %v3412_v2 }
0x14a0   :  { %3415 = vmatpush3.bf16.msra.mxu1 %v3412_v2 }
0x14a1   :  { %3417 = vmatprep.subr.bf16.mxu1 %v3416_v35 }
0x14a4   :  { %3419 = vmatpush3.bf16.msra.mxu1 %v3416_v35  ;;  %v2924_v35 = vld [vmem:[%s4182_s16 + $0x1] ss:$0 sm:$0xff] }
0x156a   :  { %v3253_v38 = vpop.f32.mrb[14].mxu1 }
0x156b   :  { %v2478_v39 = vadd.f32 %v3253_v38, %v2891_v37  ;;  %v2460_v40 = vpop.f32.mrb[15].mxu1 }
0x156c   :  { %v2477_v41 = vadd.f32 %v2891_v37, %v2460_v40  ;;  %v2913_v37 = vld [vmem:[%s4180_s14 + $0xc8] sm:$0xff]  ;;  %v2915_v40 = vld [vmem:[%s4180_s14 + $0xd8] sm:$0xff] }
0x156d   :  { %v2480_v42 = vadd.f32 %v2478_v39, %v3964_v14  ;;  %v3420_v38 = vpack.c.bf16 %v2913_v37, %v2912_v36  ;;  %v2914_v39 = vld [vmem:[%s4180_s14 + $0xd0] sm:$0xff] }
0x156e   :  { %v2479_v43 = vadd.f32 %v2477_v41, %v3962_v13  ;;  %v2896_v13 = vld [vmem:[%s4178_s12 + $0x20] sm:$0xff]  ;;  %v3424_v41 = vpack.c.bf16 %v2915_v40, %v2914_v39 }
0x156f   :  { %v2488_v44 = vsel %vm228_vm4, %v2480_v42, 0.0  ;;  %v3396_v55 = vpack.c.bf16 %v2897_v53, %v2896_v13  ;;  %3421 = vmatprep.subr.bf16.mxu1 %v3420_v38 }
0x1570   :  { %2489 = vadd.xlane.f32.xlu0 %v2488_v44  ;;  %v2485_v45 = vsel %vm228_vm4, %v2479_v43, 0.0  ;;  %3423 = vmatpush3.bf16.msra.mxu1 %v3420_v38  ;;  %v2925_v38 = vld [vmem:[%s4183_s17 + $0x1] ss:$0 sm:$0xff] }
0x1571   :  { %2486 = vadd.xlane.f32.xlu1 %v2485_v45  ;;  %3397 = vmatprep.subr.bf16.mxu0 %v3396_v55  ;;  %v2918_v45 = vld [vmem:[%s4180_s14 + $0xf0] sm:$0xff] }
0x1572   :  { %3399 = vmatpush3.bf16.msra.mxu0 %v3396_v55  ;;  %3425 = vmatprep.subr.bf16.mxu1 %v3424_v41 }
0x1573   :  { %3401 = vmatprep.subr.bf16.mxu0 %v3400_v57 }
0x1574   :  { %3427 = vmatpush3.bf16.msra.mxu1 %v3424_v41 }
0x1576   :  { %3403 = vmatpush3.bf16.msra.mxu0 %v3400_v57 }
0x15fd   :  { %v2490_v46 = vpop.xlane.xlu0 %2489 }
0x15fe   :  { %v2492_v24 = vmul.f32 0.03125, %v2490_v46  ;;  %v2487_v48 = vpop.xlane.xlu1 %2486  ;;  %v2919_v46 = vld [vmem:[%s4180_s14 + $0xf8] sm:$0xff] }
0x15ff   :  { %v2491_v49 = vmul.f32 0.03125, %v2487_v48  ;;  %v2901_v48 = vld [vmem:[%s4195_s19 + $0x1] ss:$0 sm:$0xff] }
0x1600   :  { %v2494_v18 = vsub.f32 %v2480_v42, %v2492_v24  ;;  %v2916_v42 = vld [vmem:[%s4180_s14 + $0xe0] sm:$0xff]  ;;  %v3432_v24 = vpack.c.bf16 %v2919_v46, %v2918_v45 }
0x1601   :  { %v2493_v19 = vsub.f32 %v2479_v43, %v2491_v49  ;;  %v2917_v43 = vld [vmem:[%s4180_s14 + $0xe8] sm:$0xff] }
0x1602   :  { %v2496_v50 = vmul.f32 %v2494_v18, %v2494_v18  ;;  %v3428_v44 = vpack.c.bf16 %v2917_v43, %v2916_v42 }
0x1603   :  { %v2495_v51 = vmul.f32 %v2493_v19, %v2493_v19 }
0x1604   :  { %v2500_v52 = vsel %vm228_vm4, %v2496_v50, 0.0  ;;  %3429 = vmatprep.subr.bf16.mxu1 %v3428_v44 }
0x1605   :  { %2501 = vadd.xlane.f32.xlu1 %v2500_v52  ;;  %v2497_v14 = vsel %vm228_vm4, %v2495_v51, 0.0  ;;  %3431 = vmatpush3.bf16.msra.mxu1 %v3428_v44 }
0x1606   :  { %2498 = vadd.xlane.f32.xlu0 %v2497_v14  ;;  %3433 = vmatprep.subr.bf16.mxu1 %v3432_v24 }
0x1609   :  { %3435 = vmatpush3.bf16.msra.mxu1 %v3432_v24 }
0x1692   :  { %v2502_v3 = vpop.xlane.xlu1 %2501 }
0x1693   :  { %v2504_v4 = vmul.f32 0.03125, %v2502_v3  ;;  %v2499_v8 = vpop.xlane.xlu0 %2498 }
0x1694   :  { %v2503_v5 = vmul.f32 0.03125, %v2499_v8 }
0x1695   :  { %v2506_v6 = vadd.f32 1e-12, %v2504_v4 }
0x1696   :  { %v2505_v7 = vadd.f32 1e-12, %v2503_v5 }
0x1697   :  { %3513 = vrsqrt.f32 %v2506_v6  ;;  %vm2516_vm7 = vcmp.eq.f32.partialorder %v2506_v6, inf  ;;  %v2519_v12 = vand.u32 2147483648, %v2506_v6  ;;  %vm2518_vm8 = vcmp.eq.f32.partialorder %v2506_v6, 0.0 }
0x1698   :  { %3515 = vrsqrt.f32 %v2505_v7  ;;  %vm2509_vm9 = vcmp.eq.f32.partialorder %v2505_v7, inf  ;;  %v2512_v47 = vand.u32 2147483648, %v2505_v7  ;;  %vm2511_vm10 = vcmp.eq.f32.partialorder %v2505_v7, 0.0 }
0x16a1   :  { %v3514_v9 = vpop.eup %3513 }
0x16a2   :  { %v3516_v10 = vpop.eup %3515  ;;  %v2515_v23 = vmul.f32 %v3514_v9, %v2506_v6 }
0x16a3   :  { %v2508_v11 = vmul.f32 %v3516_v10, %v2505_v7 }
0x16a4   :  { %v2517_v15 = vsel %vm2516_vm7, %v2506_v6, %v2515_v23 }
0x16a5   :  { %v2520_v17 = vsel %vm2518_vm8, %v2519_v12, %v2517_v15  ;;  %v2510_v21 = vsel %vm2509_vm9, %v2505_v7, %v2508_v11 }
0x16a6   :  { %3517 = vrcp.f32 %v2520_v17  ;;  %v2513_v22 = vsel %vm2511_vm10, %v2512_v47, %v2510_v21 }
0x16a7   :  { %3519 = vrcp.f32 %v2513_v22 }
0x16b0   :  { %v3518_v25 = vpop.eup %3517 }
0x16b1   :  { %v3520_v27 = vpop.eup %3519  ;;  %v2524_v28 = vmul.f32 %v3518_v25, %v2494_v18 }
0x16b2   :  { %v2522_v16 = vmul.f32 %v3520_v27, %v2493_v19 }
0x16b3   :  { %v2532_v29 = vmul.f32 %v2894_v26, %v2524_v28 }
0x16b4   :  { %v2531_v30 = vmul.f32 %v2894_v26, %v2522_v16 }
0x16b5   :  { %v2540_v32 = vadd.f32 %v2895_v20, %v2532_v29 }
0x16b6   :  { %v2539_v31 = vadd.f32 %v2895_v20, %v2531_v30 }
0x16b8   :  { %3262 = vmatprep.mubr.msk.f32.mxu0 %vm228_vm4, %v2539_v31 }
0x16b9   :  { %3263 = vmatmul.mubr.msk.f32.vlgmr.msra.gmra.mrb[30].mxu0 %vm228_vm4, %v2540_v32 }
0x178c   :  { %v3264_v49 = vpop.f32.mrb[30].mxu0 }
0x178d   :  { %v2632_v18 = vadd.f32 %v3264_v49, %v2901_v48  ;;  %v2626_v19 = vpop.f32.mrb[31].mxu0 }
0x178e   :  { %v2627_v50 = vadd.f32 %v2901_v48, %v2626_v19 }
0x178f   :  { %v2638_v51 = vmul.f32 0.70710677, %v2632_v18  ;;  %v2636_v56 = vmul.f32 0.5, %v2632_v18 }
0x1790   :  { %v2637_v52 = vmul.f32 0.70710677, %v2627_v50  ;;  %v2635_v54 = vmul.f32 0.5, %v2627_v50 }
0x1791   :  { %3521 = verf.f32 %v2638_v51 }
0x1792   :  { %3523 = verf.f32 %v2637_v52 }
0x179b   :  { %v3522_v14 = vpop.eup %3521 }
0x179c   :  { %v3524_v13 = vpop.eup %3523  ;;  %v2642_v53 = vadd.f32 1.0, %v3522_v14 }
0x179d   :  { %v2641_v55 = vadd.f32 1.0, %v3524_v13 }
0x179e   :  { %v2644_v58 = vmul.f32 %v2642_v53, %v2636_v56 }
0x179f   :  { %v2643_v57 = vmul.f32 %v2641_v55, %v2635_v54 }
0x17a1   :  { %3297 = vmatprep.mubr.f32.mxu1 %v2643_v57 }
0x17a2   :  { %3298 = vmatmul.mubr.f32.vlgmr.msra.gmra.mrb[16].mxu1 %v2644_v58 }
0x1875   :  { %v3299_v60 = vpop.f32.mrb[16].mxu1 }
0x1876   :  { %v2742_v61 = vadd.f32 %v3299_v60, %v2921_v59  ;;  %v2736_v62 = vpop.f32.mrb[17].mxu1 }
0x1877   :  { %v2737_v63 = vadd.f32 %v2921_v59, %v2736_v62 }
0x1878   :  { %v2746_v0 = vadd.f32 %v2742_v61, %v2540_v32 }
0x1879   :  { %v2745_v1 = vadd.f32 %v2737_v63, %v2539_v31 }
0x187a   :  { %v2754_v2 = vsel %vm228_vm4, %v2746_v0, 0.0 }
0x187b   :  { %2755 = vadd.xlane.f32.xlu1 %v2754_v2  ;;  %v2751_v3 = vsel %vm228_vm4, %v2745_v1, 0.0 }
0x187c   :  { %2752 = vadd.xlane.f32.xlu0 %v2751_v3 }
0x1908   :  { %v2756_v4 = vpop.xlane.xlu1 %2755 }
0x1909   :  { %v2758_v8 = vmul.f32 0.03125, %v2756_v4  ;;  %v2753_v5 = vpop.xlane.xlu0 %2752 }
0x190a   :  { %v2757_v6 = vmul.f32 0.03125, %v2753_v5 }
0x190b   :  { %v2760_v7 = vsub.f32 %v2746_v0, %v2758_v8 }
0x190c   :  { %v2759_v9 = vsub.f32 %v2745_v1, %v2757_v6 }
0x190d   :  { %v2762_v10 = vmul.f32 %v2760_v7, %v2760_v7 }
0x190e   :  { %v2761_v23 = vmul.f32 %v2759_v9, %v2759_v9 }
0x190f   :  { %v2766_v12 = vsel %vm228_vm4, %v2762_v10, 0.0 }
0x1910   :  { %2767 = vadd.xlane.f32.xlu1 %v2766_v12  ;;  %v2763_v11 = vsel %vm228_vm4, %v2761_v23, 0.0 }
0x1911   :  { %2764 = vadd.xlane.f32.xlu0 %v2763_v11 }
0x199d   :  { %v2768_v15 = vpop.xlane.xlu1 %2767 }
0x199e   :  { %v2770_v47 = vmul.f32 0.03125, %v2768_v15  ;;  %v2765_v17 = vpop.xlane.xlu0 %2764 }
0x199f   :  { %v2769_v21 = vmul.f32 0.03125, %v2765_v17 }
0x19a0   :  { %v2772_v22 = vadd.f32 1e-12, %v2770_v47 }
0x19a1   :  { %v2771_v25 = vadd.f32 1e-12, %v2769_v21 }
0x19a2   :  { %3525 = vrsqrt.f32 %v2772_v22  ;;  %vm2782_vm11 = vcmp.eq.f32.partialorder %v2772_v22, inf  ;;  %v2785_v16 = vand.u32 2147483648, %v2772_v22  ;;  %vm2784_vm12 = vcmp.eq.f32.partialorder %v2772_v22, 0.0 }
0x19a3   :  { %3527 = vrsqrt.f32 %v2771_v25  ;;  %vm2775_vm13 = vcmp.eq.f32.partialorder %v2771_v25, inf  ;;  %v2778_v30 = vand.u32 2147483648, %v2771_v25  ;;  %vm2777_vm14 = vcmp.eq.f32.partialorder %v2771_v25, 0.0 }
0x19ac   :  { %v3526_v26 = vpop.eup %3525 }
0x19ad   :  { %v3528_v27 = vpop.eup %3527  ;;  %v2781_v28 = vmul.f32 %v3526_v26, %v2772_v22 }
0x19ae   :  { %v2774_v20 = vmul.f32 %v3528_v27, %v2771_v25 }
0x19af   :  { %v2783_v29 = vsel %vm2782_vm11, %v2772_v22, %v2781_v28 }
0x19b0   :  { %v2786_v31 = vsel %vm2784_vm12, %v2785_v16, %v2783_v29  ;;  %v2776_v32 = vsel %vm2775_vm13, %v2771_v25, %v2774_v20 }
0x19b1   :  { %3529 = vrcp.f32 %v2786_v31  ;;  %v2779_v33 = vsel %vm2777_vm14, %v2778_v30, %v2776_v32 }
0x19b2   :  { %3531 = vrcp.f32 %v2779_v33 }
0x19bb   :  { %v3530_v34 = vpop.eup %3529 }
0x19bc   :  { %v3532_v36 = vpop.eup %3531  ;;  %v2790_v37 = vmul.f32 %v3530_v34, %v2760_v7 }
0x19bd   :  { %v2788_v39 = vmul.f32 %v3532_v36, %v2759_v9 }
0x19be   :  { %v2798_v40 = vmul.f32 %v2924_v35, %v2790_v37 }
0x19bf   :  { %v2797_v41 = vmul.f32 %v2924_v35, %v2788_v39 }
0x19c0   :  { %v2806_v42 = vadd.f32 %v2925_v38, %v2798_v40 }
0x19c1   :  { %v2805_v43 = vadd.f32 %v2925_v38, %v2797_v41 }
0x19c2   :  { %2808 = vst.msk [vmem:[#allocation2 + $0x8] sm:$0xff] %vm228_vm4, %v2806_v42 }
0x19c3   :  { %2807 = vst.msk [vmem:[#allocation2] sm:$0xff] %vm228_vm4, %v2805_v43 }
0x19c4   :  { %3544 = shalt.err (!%p3541_p4)
}
0x19c5   :  { %s3545_s24 = scalar_lea.hbm %s4184_s18, 256 }
0x19c6   :  { %p3546_p5 = scmp.ne.s32.totalorder %s4184_s18, %s3545_s24  ;;  %p3549_p6 = scmp.lt.u32.totalorder %s3545_s24, %s4184_s18 }
0x19c8   :  { %p3551_p7 = pnand %p3549_p6, %p3546_p5 }
0x19ca   :  { %3554 = shalt.err (!%p3551_p7)
}
0x19cb   :  { %s3567_s26 = smov 128   ;;  %s3568_s27 = smov 8  }
0x19cc   :  { %2820 = dma.vmem_to_hbm [thread:$0]  %s2815_s23, 256, %s4184_s18, [#allocation3], %s3567_s26, %s3567_s26, %s3568_s27  }
0x19cd   :  { %3555 = dma.done.wait [#allocation3], 256  }
0x19ce   :  { %3556 = vsyncadd [#allocation3], 4294967040 }
0x19cf   :  { %2824 = vsyncpa [#allocation3], 1 }

</bundles_post_ra>
